<compile_context>
chip_gen: v5e
topology: v5e:2x2
jax: 0.10.0
libtpu: 0.0.40
codegen_flags: <defaults>
</compile_context>

<pallas_src>
import jax
import jax.numpy as jnp
from jax import lax
from jax.experimental import pallas as pl
from jax.experimental.pallas import tpu as pltpu


# ----------------------------------------------------------------------------------
# Kernels
# ----------------------------------------------------------------------------------
def _make_lstm_kernel(seq_len, chunk_len, needs_mask, unroll):
    """Build the (batch-block, time-chunk) LSTM recurrence kernel.

    emb_ref : (Tt, Bb, Ep) bf16  time-major embedded inputs for this chunk
    wih_ref : (Ep, 4Hp)    bf16  input->gates weight (transposed, gate-block padded)
    whh_ref : (Hp, 4Hp)    bf16  hidden->gates weight (transposed, gate-block padded)
    b_ref   : (1, 4Hp)     f32   combined bias b_ih + b_hh (gate-block padded)
    hout_ref: (Bb, Hp)     f32   last hidden state (written on last time chunk only)
    h_scr/c_scr : (Bb, Hp) f32   state carried across time chunks (written once per chunk)
    xp_scr  : (Tt, Bb, 4Hp) f32  hoisted input projection for this chunk
    """
    def kernel(emb_ref, wih_ref, whh_ref, b_ref, hout_ref, h_scr, c_scr, xp_scr):
        t_chunk = pl.program_id(1)
        Tt, Bb, Ep = emb_ref.shape
        Hp = h_scr.shape[-1]

        @pl.when(t_chunk == 0)
        def _init():
            h_scr[...] = jnp.zeros_like(h_scr)
            c_scr[...] = jnp.zeros_like(c_scr)

        # Hoisted input projection: one large MXU matmul per chunk (off the serial path).
        x = emb_ref[...].reshape(Tt * Bb, Ep)                                # bf16
        xp_scr[...] = (jnp.dot(x, wih_ref[...], preferred_element_type=jnp.float32)
                       + b_ref[...]).reshape(Tt, Bb, 4 * Hp)

        def step(t, carry):
            h, c = carry                                                     # f32 vregs
            gates = xp_scr[t] + jnp.dot(h.astype(jnp.bfloat16), whh_ref[...],
                                        preferred_element_type=jnp.float32)  # (Bb, 4Hp)
            # Lane-aligned gate slices (Hp is a multiple of 128).
            i_g = jax.nn.sigmoid(gates[:, 0 * Hp:1 * Hp])
            f_g = jax.nn.sigmoid(gates[:, 1 * Hp:2 * Hp])
            g_g = jnp.tanh(gates[:, 2 * Hp:3 * Hp])
            o_g = jax.nn.sigmoid(gates[:, 3 * Hp:4 * Hp])
            c_new = f_g * c + i_g * g_g
            h_new = o_g * jnp.tanh(c_new)
            if needs_mask:
                # Padded (beyond-T) timesteps must not advance the state.
                valid = (t_chunk * chunk_len + t) < seq_len
                h_new = jnp.where(valid, h_new, h)
                c_new = jnp.where(valid, c_new, c)
            return (h_new, c_new)

        h_fin, c_fin = lax.fori_loop(0, Tt, step, (h_scr[...], c_scr[...]),
                                     unroll=unroll)
        h_scr[...] = h_fin
        c_scr[...] = c_fin

        @pl.when(t_chunk == pl.num_programs(1) - 1)
        def _emit():
            hout_ref[...] = h_scr[...]

    return kernel


def _fc_kernel(h_ref, w_ref, b_ref, o_ref):
    """Final Linear: logits block = h_last @ W_fc^T + b_fc (tiled over the vocab)."""
    o_ref[...] = (jnp.dot(h_ref[...].astype(jnp.bfloat16), w_ref[...],
                          preferred_element_type=jnp.float32) + b_ref[...])


# ----------------------------------------------------------------------------------
# Wrapper (layout glue: embedding gather, padding, weight packing, pallas_call)
# ----------------------------------------------------------------------------------
def _round_up(n, m):
    return ((n + m - 1) // m) * m


def _num_tensorcores():
    # Only v7x exposes 2 TensorCores per chip to one Pallas kernel; v5e/v6e have 1.
    try:
        kind = jax.devices()[0].device_kind.lower()
        if "v7" in kind:
            return 2
    except Exception:
        pass
    return 1


def _pad_gate_cols(w, H, Hp):
    """w: (rows, 4H) with columns [i|f|g|o] -> (rows, 4Hp), gate k at [k*Hp, k*Hp+H)."""
    rows = w.shape[0]
    out = jnp.zeros((rows, 4 * Hp), w.dtype)
    for k in range(4):
        out = out.at[:, k * Hp:k * Hp + H].set(w[:, k * H:(k + 1) * H])
    return out


def lstm_recommender_forward(x_ids, params, *, time_chunk=16):
    """x_ids: (B, T) int32 category ids. Returns (B, num_categories) float32 logits."""
    emb_table = params["embedding"]          # (C, E)
    w_ih = params["w_ih"]                    # (4H, E)  PyTorch layout
    w_hh = params["w_hh"]                    # (4H, H)
    b_ih = params["b_ih"]                    # (4H,)
    b_hh = params["b_hh"]                    # (4H,)
    w_fc = params["w_fc"]                    # (C, H)
    b_fc = params["b_fc"]                    # (C,)

    B, T = x_ids.shape
    C, E = emb_table.shape
    H = w_hh.shape[1]

    # Padded sizes: batch -> sublane multiple (8), feature dims -> lane multiple (128).
    Bp = _round_up(max(B, 8), 8)
    Ep = _round_up(E, 128)
    Hp = _round_up(H, 128)
    Cp = _round_up(C, 128)

    # Time chunking: pad T to a multiple of Tt; padded steps are masked inside the kernel.
    Tt = max(1, min(time_chunk, T))
    nt = pl.cdiv(T, Tt)
    Tp = nt * Tt
    needs_mask = (Tp != T)
    unroll = next(u for u in (8, 4, 2, 1) if Tt % u == 0)    # partial unroll, not full

    # Batch blocking: split across TensorCores only on 2-TC chips (v7x megacore).
    if _num_tensorcores() >= 2 and Bp >= 16 and Bp % 16 == 0:
        Bb = Bp // 2
    else:
        Bb = Bp          # single TC (v5e/v6e) or batch too small to split
    nb = Bp // Bb

    # --- XLA-side prep (one fused chain; bf16 stream keeps the DMA bytes minimal) ---
    # TODO(synk): the nn.Embedding gather stays in XLA (data-dependent gather).
    emb = jnp.take(emb_table.astype(jnp.bfloat16), x_ids.T, axis=0)     # (T, B, E) bf16
    emb = jnp.pad(emb, ((0, Tp - T), (0, Bp - B), (0, Ep - E)))         # (Tp, Bp, Ep)

    wih_p = _pad_gate_cols(jnp.pad(w_ih.T, ((0, Ep - E), (0, 0))), H, Hp).astype(jnp.bfloat16)
    whh_p = _pad_gate_cols(jnp.pad(w_hh.T, ((0, Hp - H), (0, 0))), H, Hp).astype(jnp.bfloat16)
    b_p = _pad_gate_cols((b_ih + b_hh).reshape(1, 4 * H), H, Hp).astype(jnp.float32)
    wfc_p = jnp.pad(w_fc.T, ((0, Hp - H), (0, Cp - C))).astype(jnp.bfloat16)
    bfc_p = jnp.pad(b_fc.reshape(1, C), ((0, 0), (0, Cp - C))).astype(jnp.float32)

    # VMEM budget from actual block/scratch sizes (default double-buffering assumed).
    vmem_est = (2 * Tt * Bb * Ep * 2          # streamed emb blocks (bf16)
                + 2 * Ep * 4 * Hp * 2         # W_ih (bf16)
                + 2 * Hp * 4 * Hp * 2         # W_hh (bf16)
                + 2 * 4 * Hp * 4              # bias
                + 2 * Bb * Hp * 4             # h output block
                + 2 * Bb * Hp * 4             # h/c scratch
                + Tt * Bb * 4 * Hp * 4)       # hoisted x-projection scratch
    vmem_limit = int(min(max(1.5 * vmem_est, 32 * 2 ** 20), 64 * 2 ** 20))

    lstm_kernel = _make_lstm_kernel(T, Tt, needs_mask, unroll)
    h_last = pl.pallas_call(
        lstm_kernel,
        out_shape=jax.ShapeDtypeStruct((Bp, Hp), jnp.float32),
        grid=(nb, nt),
        in_specs=[
            pl.BlockSpec((Tt, Bb, Ep), lambda b, t: (t, b, 0)),   # streamed / pipelined
            pl.BlockSpec((Ep, 4 * Hp), lambda b, t: (0, 0)),      # resident weights
            pl.BlockSpec((Hp, 4 * Hp), lambda b, t: (0, 0)),
            pl.BlockSpec((1, 4 * Hp), lambda b, t: (0, 0)),
        ],
        out_specs=pl.BlockSpec((Bb, Hp), lambda b, t: (b, 0)),
        scratch_shapes=[
            pltpu.VMEM((Bb, Hp), jnp.float32),            # h state (carried across chunks)
            pltpu.VMEM((Bb, Hp), jnp.float32),            # c state
            pltpu.VMEM((Tt, Bb, 4 * Hp), jnp.float32),    # hoisted input projection
        ],
        compiler_params=pltpu.CompilerParams(
            dimension_semantics=("parallel", "arbitrary"),
            vmem_limit_bytes=vmem_limit),
    )(emb, wih_p, whh_p, b_p)

    # Final Linear as its own small kernel, tiled over the vocab, so the FC weight/output
    # never sit in VMEM while the recurrence runs.
    tc = next(c for c in (512, 256, 128) if Cp % c == 0)
    logits_p = pl.pallas_call(
        _fc_kernel,
        out_shape=jax.ShapeDtypeStruct((Bp, Cp), jnp.float32),
        grid=(Cp // tc,),
        in_specs=[
            pl.BlockSpec((Bp, Hp), lambda c: (0, 0)),
            pl.BlockSpec((Hp, tc), lambda c: (0, c)),
            pl.BlockSpec((1, tc), lambda c: (0, c)),
        ],
        out_specs=pl.BlockSpec((Bp, tc), lambda c: (0, c)),
        compiler_params=pltpu.CompilerParams(dimension_semantics=("parallel",)),
    )(h_last, wfc_p, bfc_p)

    return logits_p[:B, :C]


# ----------------------------------------------------------------------------------
# Pure-JAX reference (PyTorch nn.LSTM semantics), f32 end-to-end
# ----------------------------------------------------------------------------------
def _reference_forward(x_ids, params):
    emb = jnp.take(params["embedding"], x_ids, axis=0)       # (B, T, E)
    B, T, E = emb.shape
    H = params["w_hh"].shape[1]
    w_ih, w_hh = params["w_ih"], params["w_hh"]
    b = params["b_ih"] + params["b_hh"]

    def step(carry, x_t):
        h, c = carry
        gates = x_t @ w_ih.T + h @ w_hh.T + b
        i = jax.nn.sigmoid(gates[:, 0 * H:1 * H])
        f = jax.nn.sigmoid(gates[:, 1 * H:2 * H])
        g = jnp.tanh(gates[:, 2 * H:3 * H])
        o = jax.nn.sigmoid(gates[:, 3 * H:4 * H])
        c = f * c + i * g
        h = o * jnp.tanh(c)
        return (h, c), None

    h0 = jnp.zeros((B, H), jnp.float32)
    c0 = jnp.zeros((B, H), jnp.float32)
    (h_last, _), _ = lax.scan(step, (h0, c0), jnp.transpose(emb, (1, 0, 2)))
    return h_last @ params["w_fc"].T + params["b_fc"]


def init_params(key, num_categories, embed_size, hidden_size):
    ks = jax.random.split(key, 7)
    scale = 0.1
    return {
        "embedding": scale * jax.random.normal(ks[0], (num_categories, embed_size), jnp.float32),
        "w_ih": scale * jax.random.normal(ks[1], (4 * hidden_size, embed_size), jnp.float32),
        "w_hh": scale * jax.random.normal(ks[2], (4 * hidden_size, hidden_size), jnp.float32),
        "b_ih": scale * jax.random.normal(ks[3], (4 * hidden_size,), jnp.float32),
        "b_hh": scale * jax.random.normal(ks[4], (4 * hidden_size,), jnp.float32),
        "w_fc": scale * jax.random.normal(ks[5], (num_categories, hidden_size), jnp.float32),
        "b_fc": scale * jax.random.normal(ks[6], (num_categories,), jnp.float32),
    }


if __name__ == "__main__":
    # Small shapes matching the module defaults: embed=50, hidden=64; toy vocab=16, batch=2, seq=8.
    NUM_CATEGORIES = 16
    EMBED_SIZE = 50
    HIDDEN_SIZE = 64
    B, T = 2, 8

    key = jax.random.PRNGKey(0)
    pkey, xkey = jax.random.split(key)
    params = init_params(pkey, NUM_CATEGORIES, EMBED_SIZE, HIDDEN_SIZE)
    x_ids = jax.random.randint(xkey, (B, T), 0, NUM_CATEGORIES, dtype=jnp.int32)

    logits = lstm_recommender_forward(x_ids, params)
    logits = jax.block_until_ready(logits)

    ref = _reference_forward(x_ids, params)
    assert logits.shape == (B, NUM_CATEGORIES)
    # bf16 MXU operands (f32 accumulate / state) => slightly looser tolerance than pure f32.
    assert jnp.allclose(logits, ref, atol=2e-2, rtol=2e-2), "mismatch vs pure-JAX reference"

    print("KERNEL_OK")
</pallas_src>

<mosaic_0001>
module attributes {stable_mosaic.version = 11 : i64} {
  func.func @kernel(%arg0: i32, %arg1: i32, %arg2: memref<8x8x128xbf16, #tpu.memory_space<vmem>>, %arg3: memref<128x512xbf16, #tpu.memory_space<vmem>>, %arg4: memref<128x512xbf16, #tpu.memory_space<vmem>>, %arg5: memref<1x512xf32, #tpu.memory_space<vmem>>, %arg6: memref<8x128xf32, #tpu.memory_space<vmem>>, %arg7: memref<8x128xf32, #tpu.memory_space<vmem>>, %arg8: memref<8x128xf32, #tpu.memory_space<vmem>>, %arg9: memref<8x8x512xf32, #tpu.memory_space<vmem>>) attributes {dimension_semantics = [#tpu.dimension_semantics<parallel>, #tpu.dimension_semantics<arbitrary>], iteration_bounds = array<i64: 1, 1>, scalar_prefetch = 0 : i64, scratch_operands = 3 : i64, tpu.core_type = #tpu.core_type<tc>, window_params = [{transform_indices = @transform_0, window_bounds = array<i64: 8, 8, 128>}, {pipeline_mode = #tpu.pipeline_mode<synchronous>, transform_indices = @transform_1, window_bounds = array<i64: 128, 512>}, {pipeline_mode = #tpu.pipeline_mode<synchronous>, transform_indices = @transform_2, window_bounds = array<i64: 128, 512>}, {pipeline_mode = #tpu.pipeline_mode<synchronous>, transform_indices = @transform_3, window_bounds = array<i64: 1, 512>}, {transform_indices = @transform_4, window_bounds = array<i64: 8, 128>}]} {
    %c0_i32 = arith.constant 0 : i32
    %0 = arith.cmpi eq, %arg1, %c0_i32 : i32
    %1 = arith.extui %0 : i1 to i32
    %c0_i32_0 = arith.constant 0 : i32
    %2 = arith.cmpi ne, %1, %c0_i32_0 : i32
    scf.if %2 {
      %cst_85 = arith.constant 0.000000e+00 : f32
      %275 = vector.broadcast %cst_85 : f32 to vector<8x128xf32>
      %c0_86 = arith.constant 0 : index
      %c0_87 = arith.constant 0 : index
      %276 = vector.load %arg7[%c0_86, %c0_87] : memref<8x128xf32, #tpu.memory_space<vmem>>, vector<8x128xf32>
      tpu.vector_store %arg7[%c0_86, %c0_87], %275 {strides = array<i32>} : memref<8x128xf32, #tpu.memory_space<vmem>>, vector<8x128xf32>,
      %cst_88 = arith.constant 0.000000e+00 : f32
      %277 = vector.broadcast %cst_88 : f32 to vector<8x128xf32>
      %c0_89 = arith.constant 0 : index
      %c0_90 = arith.constant 0 : index
      %278 = vector.load %arg8[%c0_89, %c0_90] : memref<8x128xf32, #tpu.memory_space<vmem>>, vector<8x128xf32>
      tpu.vector_store %arg8[%c0_89, %c0_90], %277 {strides = array<i32>} : memref<8x128xf32, #tpu.memory_space<vmem>>, vector<8x128xf32>,
    } else {
    }
    %c0 = arith.constant 0 : index
    %c0_1 = arith.constant 0 : index
    %c0_2 = arith.constant 0 : index
    %3 = vector.load %arg2[%c0, %c0_1, %c0_2] : memref<8x8x128xbf16, #tpu.memory_space<vmem>>, vector<8x8x128xbf16>
    %4 = vector.shape_cast %3 : vector<8x8x128xbf16> to vector<64x128xbf16>
    %c0_3 = arith.constant 0 : index
    %c0_4 = arith.constant 0 : index
    %5 = vector.load %arg3[%c0_3, %c0_4] : memref<128x512xbf16, #tpu.memory_space<vmem>>, vector<128x512xbf16>
    %cst = arith.constant dense<0.000000e+00> : vector<64x512xf32>
    %6 = tpu.matmul %4, %5, %cst {dimension_numbers = #tpu.dot_dimension_numbers<[1], [0], [0], [1], [0, 0, 1, 1], [], []>} : vector<64x128xbf16>, vector<128x512xbf16>, vector<64x512xf32> -> vector<64x512xf32>
    %c0_5 = arith.constant 0 : index
    %c0_6 = arith.constant 0 : index
    %7 = vector.load %arg5[%c0_5, %c0_6] : memref<1x512xf32, #tpu.memory_space<vmem>>, vector<1x512xf32>
    %8 = vector.broadcast %7 : vector<1x512xf32> to vector<64x512xf32>
    %9 = arith.addf %6, %8 : vector<64x512xf32>
    %10 = vector.shape_cast %9 : vector<64x512xf32> to vector<8x8x512xf32>
    %c0_7 = arith.constant 0 : index
    %c0_8 = arith.constant 0 : index
    %c0_9 = arith.constant 0 : index
    %11 = vector.load %arg9[%c0_7, %c0_8, %c0_9] : memref<8x8x512xf32, #tpu.memory_space<vmem>>, vector<8x8x512xf32>
    tpu.vector_store %arg9[%c0_7, %c0_8, %c0_9], %10 {strides = array<i32>} : memref<8x8x512xf32, #tpu.memory_space<vmem>>, vector<8x8x512xf32>,
    %c0_10 = arith.constant 0 : index
    %c0_11 = arith.constant 0 : index
    %12 = vector.load %arg7[%c0_10, %c0_11] : memref<8x128xf32, #tpu.memory_space<vmem>>, vector<8x128xf32>
    %c0_12 = arith.constant 0 : index
    %c0_13 = arith.constant 0 : index
    %13 = vector.load %arg8[%c0_12, %c0_13] : memref<8x128xf32, #tpu.memory_space<vmem>>, vector<8x128xf32>
    %c0_i32_14 = arith.constant 0 : i32
    %14 = arith.index_cast %c0_i32_14 : i32 to index
    %c0_15 = arith.constant 0 : index
    %c0_16 = arith.constant 0 : index
    %15 = vector.load %arg9[%14, %c0_15, %c0_16] : memref<8x8x512xf32, #tpu.memory_space<vmem>>, vector<1x8x512xf32>
    %16 = vector.shape_cast %15 : vector<1x8x512xf32> to vector<8x512xf32>
    %17 = arith.truncf %12 : vector<8x128xf32> to vector<8x128xbf16>
    %c0_17 = arith.constant 0 : index
    %c0_18 = arith.constant 0 : index
    %18 = vector.load %arg4[%c0_17, %c0_18] : memref<128x512xbf16, #tpu.memory_space<vmem>>, vector<128x512xbf16>
    %cst_19 = arith.constant dense<0.000000e+00> : vector<8x512xf32>
    %19 = tpu.matmul %17, %18, %cst_19 {dimension_numbers = #tpu.dot_dimension_numbers<[1], [0], [0], [1], [0, 0, 1, 1], [], []>} : vector<8x128xbf16>, vector<128x512xbf16>, vector<8x512xf32> -> vector<8x512xf32>
    %20 = arith.addf %16, %19 : vector<8x512xf32>
    %21 = vector.extract_strided_slice %20 {offsets = [0, 0], sizes = [8, 128], strides = [1, 1]} : vector<8x512xf32> to vector<8x128xf32>
    %22 = arith.negf %21 : vector<8x128xf32>
    %23 = math.exp %22 : vector<8x128xf32>
    %cst_20 = arith.constant 1.000000e+00 : f32
    %24 = vector.broadcast %cst_20 : f32 to vector<8x128xf32>
    %25 = arith.addf %24, %23 : vector<8x128xf32>
    %26 = arith.divf %24, %25 : vector<8x128xf32>
    %27 = vector.extract_strided_slice %20 {offsets = [0, 128], sizes = [8, 128], strides = [1, 1]} : vector<8x512xf32> to vector<8x128xf32>
    %28 = arith.negf %27 : vector<8x128xf32>
    %29 = math.exp %28 : vector<8x128xf32>
    %cst_21 = arith.constant 1.000000e+00 : f32
    %30 = vector.broadcast %cst_21 : f32 to vector<8x128xf32>
    %31 = arith.addf %30, %29 : vector<8x128xf32>
    %32 = arith.divf %30, %31 : vector<8x128xf32>
    %33 = vector.extract_strided_slice %20 {offsets = [0, 256], sizes = [8, 128], strides = [1, 1]} : vector<8x512xf32> to vector<8x128xf32>
    %34 = math.tanh %33 : vector<8x128xf32>
    %35 = vector.extract_strided_slice %20 {offsets = [0, 384], sizes = [8, 128], strides = [1, 1]} : vector<8x512xf32> to vector<8x128xf32>
    %36 = arith.negf %35 : vector<8x128xf32>
    %37 = math.exp %36 : vector<8x128xf32>
    %cst_22 = arith.constant 1.000000e+00 : f32
    %38 = vector.broadcast %cst_22 : f32 to vector<8x128xf32>
    %39 = arith.addf %38, %37 : vector<8x128xf32>
    %40 = arith.divf %38, %39 : vector<8x128xf32>
    %41 = arith.mulf %32, %13 : vector<8x128xf32>
    %42 = arith.mulf %26, %34 : vector<8x128xf32>
    %43 = arith.addf %41, %42 : vector<8x128xf32>
    %44 = math.tanh %43 : vector<8x128xf32>
    %45 = arith.mulf %40, %44 : vector<8x128xf32>
    %c1_i32 = arith.constant 1 : i32
    %46 = arith.index_cast %c1_i32 : i32 to index
    %c0_23 = arith.constant 0 : index
    %c0_24 = arith.constant 0 : index
    %47 = vector.load %arg9[%46, %c0_23, %c0_24] : memref<8x8x512xf32, #tpu.memory_space<vmem>>, vector<1x8x512xf32>
    %48 = vector.shape_cast %47 : vector<1x8x512xf32> to vector<8x512xf32>
    %49 = arith.truncf %45 : vector<8x128xf32> to vector<8x128xbf16>
    %c0_25 = arith.constant 0 : index
    %c0_26 = arith.constant 0 : index
    %50 = vector.load %arg4[%c0_25, %c0_26] : memref<128x512xbf16, #tpu.memory_space<vmem>>, vector<128x512xbf16>
    %cst_27 = arith.constant dense<0.000000e+00> : vector<8x512xf32>
    %51 = tpu.matmul %49, %50, %cst_27 {dimension_numbers = #tpu.dot_dimension_numbers<[1], [0], [0], [1], [0, 0, 1, 1], [], []>} : vector<8x128xbf16>, vector<128x512xbf16>, vector<8x512xf32> -> vector<8x512xf32>
    %52 = arith.addf %48, %51 : vector<8x512xf32>
    %53 = vector.extract_strided_slice %52 {offsets = [0, 0], sizes = [8, 128], strides = [1, 1]} : vector<8x512xf32> to vector<8x128xf32>
    %54 = arith.negf %53 : vector<8x128xf32>
    %55 = math.exp %54 : vector<8x128xf32>
    %cst_28 = arith.constant 1.000000e+00 : f32
    %56 = vector.broadcast %cst_28 : f32 to vector<8x128xf32>
    %57 = arith.addf %56, %55 : vector<8x128xf32>
    %58 = arith.divf %56, %57 : vector<8x128xf32>
    %59 = vector.extract_strided_slice %52 {offsets = [0, 128], sizes = [8, 128], strides = [1, 1]} : vector<8x512xf32> to vector<8x128xf32>
    %60 = arith.negf %59 : vector<8x128xf32>
    %61 = math.exp %60 : vector<8x128xf32>
    %cst_29 = arith.constant 1.000000e+00 : f32
    %62 = vector.broadcast %cst_29 : f32 to vector<8x128xf32>
    %63 = arith.addf %62, %61 : vector<8x128xf32>
    %64 = arith.divf %62, %63 : vector<8x128xf32>
    %65 = vector.extract_strided_slice %52 {offsets = [0, 256], sizes = [8, 128], strides = [1, 1]} : vector<8x512xf32> to vector<8x128xf32>
    %66 = math.tanh %65 : vector<8x128xf32>
    %67 = vector.extract_strided_slice %52 {offsets = [0, 384], sizes = [8, 128], strides = [1, 1]} : vector<8x512xf32> to vector<8x128xf32>
    %68 = arith.negf %67 : vector<8x128xf32>
    %69 = math.exp %68 : vector<8x128xf32>
    %cst_30 = arith.constant 1.000000e+00 : f32
    %70 = vector.broadcast %cst_30 : f32 to vector<8x128xf32>
    %71 = arith.addf %70, %69 : vector<8x128xf32>
    %72 = arith.divf %70, %71 : vector<8x128xf32>
    %73 = arith.mulf %64, %43 : vector<8x128xf32>
    %74 = arith.mulf %58, %66 : vector<8x128xf32>
    %75 = arith.addf %73, %74 : vector<8x128xf32>
    %76 = math.tanh %75 : vector<8x128xf32>
    %77 = arith.mulf %72, %76 : vector<8x128xf32>
    %c2_i32 = arith.constant 2 : i32
    %78 = arith.index_cast %c2_i32 : i32 to index
    %c0_31 = arith.constant 0 : index
    %c0_32 = arith.constant 0 : index
    %79 = vector.load %arg9[%78, %c0_31, %c0_32] : memref<8x8x512xf32, #tpu.memory_space<vmem>>, vector<1x8x512xf32>
    %80 = vector.shape_cast %79 : vector<1x8x512xf32> to vector<8x512xf32>
    %81 = arith.truncf %77 : vector<8x128xf32> to vector<8x128xbf16>
    %c0_33 = arith.constant 0 : index
    %c0_34 = arith.constant 0 : index
    %82 = vector.load %arg4[%c0_33, %c0_34] : memref<128x512xbf16, #tpu.memory_space<vmem>>, vector<128x512xbf16>
    %cst_35 = arith.constant dense<0.000000e+00> : vector<8x512xf32>
    %83 = tpu.matmul %81, %82, %cst_35 {dimension_numbers = #tpu.dot_dimension_numbers<[1], [0], [0], [1], [0, 0, 1, 1], [], []>} : vector<8x128xbf16>, vector<128x512xbf16>, vector<8x512xf32> -> vector<8x512xf32>
    %84 = arith.addf %80, %83 : vector<8x512xf32>
    %85 = vector.extract_strided_slice %84 {offsets = [0, 0], sizes = [8, 128], strides = [1, 1]} : vector<8x512xf32> to vector<8x128xf32>
    %86 = arith.negf %85 : vector<8x128xf32>
    %87 = math.exp %86 : vector<8x128xf32>
    %cst_36 = arith.constant 1.000000e+00 : f32
    %88 = vector.broadcast %cst_36 : f32 to vector<8x128xf32>
    %89 = arith.addf %88, %87 : vector<8x128xf32>
    %90 = arith.divf %88, %89 : vector<8x128xf32>
    %91 = vector.extract_strided_slice %84 {offsets = [0, 128], sizes = [8, 128], strides = [1, 1]} : vector<8x512xf32> to vector<8x128xf32>
    %92 = arith.negf %91 : vector<8x128xf32>
    %93 = math.exp %92 : vector<8x128xf32>
    %cst_37 = arith.constant 1.000000e+00 : f32
    %94 = vector.broadcast %cst_37 : f32 to vector<8x128xf32>
    %95 = arith.addf %94, %93 : vector<8x128xf32>
    %96 = arith.divf %94, %95 : vector<8x128xf32>
    %97 = vector.extract_strided_slice %84 {offsets = [0, 256], sizes = [8, 128], strides = [1, 1]} : vector<8x512xf32> to vector<8x128xf32>
    %98 = math.tanh %97 : vector<8x128xf32>
    %99 = vector.extract_strided_slice %84 {offsets = [0, 384], sizes = [8, 128], strides = [1, 1]} : vector<8x512xf32> to vector<8x128xf32>
    %100 = arith.negf %99 : vector<8x128xf32>
    %101 = math.exp %100 : vector<8x128xf32>
    %cst_38 = arith.constant 1.000000e+00 : f32
    %102 = vector.broadcast %cst_38 : f32 to vector<8x128xf32>
    %103 = arith.addf %102, %101 : vector<8x128xf32>
    %104 = arith.divf %102, %103 : vector<8x128xf32>
    %105 = arith.mulf %96, %75 : vector<8x128xf32>
    %106 = arith.mulf %90, %98 : vector<8x128xf32>
    %107 = arith.addf %105, %106 : vector<8x128xf32>
    %108 = math.tanh %107 : vector<8x128xf32>
    %109 = arith.mulf %104, %108 : vector<8x128xf32>
    %c3_i32 = arith.constant 3 : i32
    %110 = arith.index_cast %c3_i32 : i32 to index
    %c0_39 = arith.constant 0 : index
    %c0_40 = arith.constant 0 : index
    %111 = vector.load %arg9[%110, %c0_39, %c0_40] : memref<8x8x512xf32, #tpu.memory_space<vmem>>, vector<1x8x512xf32>
    %112 = vector.shape_cast %111 : vector<1x8x512xf32> to vector<8x512xf32>
    %113 = arith.truncf %109 : vector<8x128xf32> to vector<8x128xbf16>
    %c0_41 = arith.constant 0 : index
    %c0_42 = arith.constant 0 : index
    %114 = vector.load %arg4[%c0_41, %c0_42] : memref<128x512xbf16, #tpu.memory_space<vmem>>, vector<128x512xbf16>
    %cst_43 = arith.constant dense<0.000000e+00> : vector<8x512xf32>
    %115 = tpu.matmul %113, %114, %cst_43 {dimension_numbers = #tpu.dot_dimension_numbers<[1], [0], [0], [1], [0, 0, 1, 1], [], []>} : vector<8x128xbf16>, vector<128x512xbf16>, vector<8x512xf32> -> vector<8x512xf32>
    %116 = arith.addf %112, %115 : vector<8x512xf32>
    %117 = vector.extract_strided_slice %116 {offsets = [0, 0], sizes = [8, 128], strides = [1, 1]} : vector<8x512xf32> to vector<8x128xf32>
    %118 = arith.negf %117 : vector<8x128xf32>
    %119 = math.exp %118 : vector<8x128xf32>
    %cst_44 = arith.constant 1.000000e+00 : f32
    %120 = vector.broadcast %cst_44 : f32 to vector<8x128xf32>
    %121 = arith.addf %120, %119 : vector<8x128xf32>
    %122 = arith.divf %120, %121 : vector<8x128xf32>
    %123 = vector.extract_strided_slice %116 {offsets = [0, 128], sizes = [8, 128], strides = [1, 1]} : vector<8x512xf32> to vector<8x128xf32>
    %124 = arith.negf %123 : vector<8x128xf32>
    %125 = math.exp %124 : vector<8x128xf32>
    %cst_45 = arith.constant 1.000000e+00 : f32
    %126 = vector.broadcast %cst_45 : f32 to vector<8x128xf32>
    %127 = arith.addf %126, %125 : vector<8x128xf32>
    %128 = arith.divf %126, %127 : vector<8x128xf32>
    %129 = vector.extract_strided_slice %116 {offsets = [0, 256], sizes = [8, 128], strides = [1, 1]} : vector<8x512xf32> to vector<8x128xf32>
    %130 = math.tanh %129 : vector<8x128xf32>
    %131 = vector.extract_strided_slice %116 {offsets = [0, 384], sizes = [8, 128], strides = [1, 1]} : vector<8x512xf32> to vector<8x128xf32>
    %132 = arith.negf %131 : vector<8x128xf32>
    %133 = math.exp %132 : vector<8x128xf32>
    %cst_46 = arith.constant 1.000000e+00 : f32
    %134 = vector.broadcast %cst_46 : f32 to vector<8x128xf32>
    %135 = arith.addf %134, %133 : vector<8x128xf32>
    %136 = arith.divf %134, %135 : vector<8x128xf32>
    %137 = arith.mulf %128, %107 : vector<8x128xf32>
    %138 = arith.mulf %122, %130 : vector<8x128xf32>
    %139 = arith.addf %137, %138 : vector<8x128xf32>
    %140 = math.tanh %139 : vector<8x128xf32>
    %141 = arith.mulf %136, %140 : vector<8x128xf32>
    %c4_i32 = arith.constant 4 : i32
    %142 = arith.index_cast %c4_i32 : i32 to index
    %c0_47 = arith.constant 0 : index
    %c0_48 = arith.constant 0 : index
    %143 = vector.load %arg9[%142, %c0_47, %c0_48] : memref<8x8x512xf32, #tpu.memory_space<vmem>>, vector<1x8x512xf32>
    %144 = vector.shape_cast %143 : vector<1x8x512xf32> to vector<8x512xf32>
    %145 = arith.truncf %141 : vector<8x128xf32> to vector<8x128xbf16>
    %c0_49 = arith.constant 0 : index
    %c0_50 = arith.constant 0 : index
    %146 = vector.load %arg4[%c0_49, %c0_50] : memref<128x512xbf16, #tpu.memory_space<vmem>>, vector<128x512xbf16>
    %cst_51 = arith.constant dense<0.000000e+00> : vector<8x512xf32>
    %147 = tpu.matmul %145, %146, %cst_51 {dimension_numbers = #tpu.dot_dimension_numbers<[1], [0], [0], [1], [0, 0, 1, 1], [], []>} : vector<8x128xbf16>, vector<128x512xbf16>, vector<8x512xf32> -> vector<8x512xf32>
    %148 = arith.addf %144, %147 : vector<8x512xf32>
    %149 = vector.extract_strided_slice %148 {offsets = [0, 0], sizes = [8, 128], strides = [1, 1]} : vector<8x512xf32> to vector<8x128xf32>
    %150 = arith.negf %149 : vector<8x128xf32>
    %151 = math.exp %150 : vector<8x128xf32>
    %cst_52 = arith.constant 1.000000e+00 : f32
    %152 = vector.broadcast %cst_52 : f32 to vector<8x128xf32>
    %153 = arith.addf %152, %151 : vector<8x128xf32>
    %154 = arith.divf %152, %153 : vector<8x128xf32>
    %155 = vector.extract_strided_slice %148 {offsets = [0, 128], sizes = [8, 128], strides = [1, 1]} : vector<8x512xf32> to vector<8x128xf32>
    %156 = arith.negf %155 : vector<8x128xf32>
    %157 = math.exp %156 : vector<8x128xf32>
    %cst_53 = arith.constant 1.000000e+00 : f32
    %158 = vector.broadcast %cst_53 : f32 to vector<8x128xf32>
    %159 = arith.addf %158, %157 : vector<8x128xf32>
    %160 = arith.divf %158, %159 : vector<8x128xf32>
    %161 = vector.extract_strided_slice %148 {offsets = [0, 256], sizes = [8, 128], strides = [1, 1]} : vector<8x512xf32> to vector<8x128xf32>
    %162 = math.tanh %161 : vector<8x128xf32>
    %163 = vector.extract_strided_slice %148 {offsets = [0, 384], sizes = [8, 128], strides = [1, 1]} : vector<8x512xf32> to vector<8x128xf32>
    %164 = arith.negf %163 : vector<8x128xf32>
    %165 = math.exp %164 : vector<8x128xf32>
    %cst_54 = arith.constant 1.000000e+00 : f32
    %166 = vector.broadcast %cst_54 : f32 to vector<8x128xf32>
    %167 = arith.addf %166, %165 : vector<8x128xf32>
    %168 = arith.divf %166, %167 : vector<8x128xf32>
    %169 = arith.mulf %160, %139 : vector<8x128xf32>
    %170 = arith.mulf %154, %162 : vector<8x128xf32>
    %171 = arith.addf %169, %170 : vector<8x128xf32>
    %172 = math.tanh %171 : vector<8x128xf32>
    %173 = arith.mulf %168, %172 : vector<8x128xf32>
    %c5_i32 = arith.constant 5 : i32
    %174 = arith.index_cast %c5_i32 : i32 to index
    %c0_55 = arith.constant 0 : index
    %c0_56 = arith.constant 0 : index
    %175 = vector.load %arg9[%174, %c0_55, %c0_56] : memref<8x8x512xf32, #tpu.memory_space<vmem>>, vector<1x8x512xf32>
    %176 = vector.shape_cast %175 : vector<1x8x512xf32> to vector<8x512xf32>
    %177 = arith.truncf %173 : vector<8x128xf32> to vector<8x128xbf16>
    %c0_57 = arith.constant 0 : index
    %c0_58 = arith.constant 0 : index
    %178 = vector.load %arg4[%c0_57, %c0_58] : memref<128x512xbf16, #tpu.memory_space<vmem>>, vector<128x512xbf16>
    %cst_59 = arith.constant dense<0.000000e+00> : vector<8x512xf32>
    %179 = tpu.matmul %177, %178, %cst_59 {dimension_numbers = #tpu.dot_dimension_numbers<[1], [0], [0], [1], [0, 0, 1, 1], [], []>} : vector<8x128xbf16>, vector<128x512xbf16>, vector<8x512xf32> -> vector<8x512xf32>
    %180 = arith.addf %176, %179 : vector<8x512xf32>
    %181 = vector.extract_strided_slice %180 {offsets = [0, 0], sizes = [8, 128], strides = [1, 1]} : vector<8x512xf32> to vector<8x128xf32>
    %182 = arith.negf %181 : vector<8x128xf32>
    %183 = math.exp %182 : vector<8x128xf32>
    %cst_60 = arith.constant 1.000000e+00 : f32
    %184 = vector.broadcast %cst_60 : f32 to vector<8x128xf32>
    %185 = arith.addf %184, %183 : vector<8x128xf32>
    %186 = arith.divf %184, %185 : vector<8x128xf32>
    %187 = vector.extract_strided_slice %180 {offsets = [0, 128], sizes = [8, 128], strides = [1, 1]} : vector<8x512xf32> to vector<8x128xf32>
    %188 = arith.negf %187 : vector<8x128xf32>
    %189 = math.exp %188 : vector<8x128xf32>
    %cst_61 = arith.constant 1.000000e+00 : f32
    %190 = vector.broadcast %cst_61 : f32 to vector<8x128xf32>
    %191 = arith.addf %190, %189 : vector<8x128xf32>
    %192 = arith.divf %190, %191 : vector<8x128xf32>
    %193 = vector.extract_strided_slice %180 {offsets = [0, 256], sizes = [8, 128], strides = [1, 1]} : vector<8x512xf32> to vector<8x128xf32>
    %194 = math.tanh %193 : vector<8x128xf32>
    %195 = vector.extract_strided_slice %180 {offsets = [0, 384], sizes = [8, 128], strides = [1, 1]} : vector<8x512xf32> to vector<8x128xf32>
    %196 = arith.negf %195 : vector<8x128xf32>
    %197 = math.exp %196 : vector<8x128xf32>
    %cst_62 = arith.constant 1.000000e+00 : f32
    %198 = vector.broadcast %cst_62 : f32 to vector<8x128xf32>
    %199 = arith.addf %198, %197 : vector<8x128xf32>
    %200 = arith.divf %198, %199 : vector<8x128xf32>
    %201 = arith.mulf %192, %171 : vector<8x128xf32>
    %202 = arith.mulf %186, %194 : vector<8x128xf32>
    %203 = arith.addf %201, %202 : vector<8x128xf32>
    %204 = math.tanh %203 : vector<8x128xf32>
    %205 = arith.mulf %200, %204 : vector<8x128xf32>
    %c6_i32 = arith.constant 6 : i32
    %206 = arith.index_cast %c6_i32 : i32 to index
    %c0_63 = arith.constant 0 : index
    %c0_64 = arith.constant 0 : index
    %207 = vector.load %arg9[%206, %c0_63, %c0_64] : memref<8x8x512xf32, #tpu.memory_space<vmem>>, vector<1x8x512xf32>
    %208 = vector.shape_cast %207 : vector<1x8x512xf32> to vector<8x512xf32>
    %209 = arith.truncf %205 : vector<8x128xf32> to vector<8x128xbf16>
    %c0_65 = arith.constant 0 : index
    %c0_66 = arith.constant 0 : index
    %210 = vector.load %arg4[%c0_65, %c0_66] : memref<128x512xbf16, #tpu.memory_space<vmem>>, vector<128x512xbf16>
    %cst_67 = arith.constant dense<0.000000e+00> : vector<8x512xf32>
    %211 = tpu.matmul %209, %210, %cst_67 {dimension_numbers = #tpu.dot_dimension_numbers<[1], [0], [0], [1], [0, 0, 1, 1], [], []>} : vector<8x128xbf16>, vector<128x512xbf16>, vector<8x512xf32> -> vector<8x512xf32>
    %212 = arith.addf %208, %211 : vector<8x512xf32>
    %213 = vector.extract_strided_slice %212 {offsets = [0, 0], sizes = [8, 128], strides = [1, 1]} : vector<8x512xf32> to vector<8x128xf32>
    %214 = arith.negf %213 : vector<8x128xf32>
    %215 = math.exp %214 : vector<8x128xf32>
    %cst_68 = arith.constant 1.000000e+00 : f32
    %216 = vector.broadcast %cst_68 : f32 to vector<8x128xf32>
    %217 = arith.addf %216, %215 : vector<8x128xf32>
    %218 = arith.divf %216, %217 : vector<8x128xf32>
    %219 = vector.extract_strided_slice %212 {offsets = [0, 128], sizes = [8, 128], strides = [1, 1]} : vector<8x512xf32> to vector<8x128xf32>
    %220 = arith.negf %219 : vector<8x128xf32>
    %221 = math.exp %220 : vector<8x128xf32>
    %cst_69 = arith.constant 1.000000e+00 : f32
    %222 = vector.broadcast %cst_69 : f32 to vector<8x128xf32>
    %223 = arith.addf %222, %221 : vector<8x128xf32>
    %224 = arith.divf %222, %223 : vector<8x128xf32>
    %225 = vector.extract_strided_slice %212 {offsets = [0, 256], sizes = [8, 128], strides = [1, 1]} : vector<8x512xf32> to vector<8x128xf32>
    %226 = math.tanh %225 : vector<8x128xf32>
    %227 = vector.extract_strided_slice %212 {offsets = [0, 384], sizes = [8, 128], strides = [1, 1]} : vector<8x512xf32> to vector<8x128xf32>
    %228 = arith.negf %227 : vector<8x128xf32>
    %229 = math.exp %228 : vector<8x128xf32>
    %cst_70 = arith.constant 1.000000e+00 : f32
    %230 = vector.broadcast %cst_70 : f32 to vector<8x128xf32>
    %231 = arith.addf %230, %229 : vector<8x128xf32>
    %232 = arith.divf %230, %231 : vector<8x128xf32>
    %233 = arith.mulf %224, %203 : vector<8x128xf32>
    %234 = arith.mulf %218, %226 : vector<8x128xf32>
    %235 = arith.addf %233, %234 : vector<8x128xf32>
    %236 = math.tanh %235 : vector<8x128xf32>
    %237 = arith.mulf %232, %236 : vector<8x128xf32>
    %c7_i32 = arith.constant 7 : i32
    %238 = arith.index_cast %c7_i32 : i32 to index
    %c0_71 = arith.constant 0 : index
    %c0_72 = arith.constant 0 : index
    %239 = vector.load %arg9[%238, %c0_71, %c0_72] : memref<8x8x512xf32, #tpu.memory_space<vmem>>, vector<1x8x512xf32>
    %240 = vector.shape_cast %239 : vector<1x8x512xf32> to vector<8x512xf32>
    %241 = arith.truncf %237 : vector<8x128xf32> to vector<8x128xbf16>
    %c0_73 = arith.constant 0 : index
    %c0_74 = arith.constant 0 : index
    %242 = vector.load %arg4[%c0_73, %c0_74] : memref<128x512xbf16, #tpu.memory_space<vmem>>, vector<128x512xbf16>
    %cst_75 = arith.constant dense<0.000000e+00> : vector<8x512xf32>
    %243 = tpu.matmul %241, %242, %cst_75 {dimension_numbers = #tpu.dot_dimension_numbers<[1], [0], [0], [1], [0, 0, 1, 1], [], []>} : vector<8x128xbf16>, vector<128x512xbf16>, vector<8x512xf32> -> vector<8x512xf32>
    %244 = arith.addf %240, %243 : vector<8x512xf32>
    %245 = vector.extract_strided_slice %244 {offsets = [0, 0], sizes = [8, 128], strides = [1, 1]} : vector<8x512xf32> to vector<8x128xf32>
    %246 = arith.negf %245 : vector<8x128xf32>
    %247 = math.exp %246 : vector<8x128xf32>
    %cst_76 = arith.constant 1.000000e+00 : f32
    %248 = vector.broadcast %cst_76 : f32 to vector<8x128xf32>
    %249 = arith.addf %248, %247 : vector<8x128xf32>
    %250 = arith.divf %248, %249 : vector<8x128xf32>
    %251 = vector.extract_strided_slice %244 {offsets = [0, 128], sizes = [8, 128], strides = [1, 1]} : vector<8x512xf32> to vector<8x128xf32>
    %252 = arith.negf %251 : vector<8x128xf32>
    %253 = math.exp %252 : vector<8x128xf32>
    %cst_77 = arith.constant 1.000000e+00 : f32
    %254 = vector.broadcast %cst_77 : f32 to vector<8x128xf32>
    %255 = arith.addf %254, %253 : vector<8x128xf32>
    %256 = arith.divf %254, %255 : vector<8x128xf32>
    %257 = vector.extract_strided_slice %244 {offsets = [0, 256], sizes = [8, 128], strides = [1, 1]} : vector<8x512xf32> to vector<8x128xf32>
    %258 = math.tanh %257 : vector<8x128xf32>
    %259 = vector.extract_strided_slice %244 {offsets = [0, 384], sizes = [8, 128], strides = [1, 1]} : vector<8x512xf32> to vector<8x128xf32>
    %260 = arith.negf %259 : vector<8x128xf32>
    %261 = math.exp %260 : vector<8x128xf32>
    %cst_78 = arith.constant 1.000000e+00 : f32
    %262 = vector.broadcast %cst_78 : f32 to vector<8x128xf32>
    %263 = arith.addf %262, %261 : vector<8x128xf32>
    %264 = arith.divf %262, %263 : vector<8x128xf32>
    %265 = arith.mulf %256, %235 : vector<8x128xf32>
    %266 = arith.mulf %250, %258 : vector<8x128xf32>
    %267 = arith.addf %265, %266 : vector<8x128xf32>
    %268 = math.tanh %267 : vector<8x128xf32>
    %269 = arith.mulf %264, %268 : vector<8x128xf32>
    %c8_i32 = arith.constant 8 : i32
    %c0_79 = arith.constant 0 : index
    %c0_80 = arith.constant 0 : index
    %270 = vector.load %arg7[%c0_79, %c0_80] : memref<8x128xf32, #tpu.memory_space<vmem>>, vector<8x128xf32>
    tpu.vector_store %arg7[%c0_79, %c0_80], %269 {strides = array<i32>} : memref<8x128xf32, #tpu.memory_space<vmem>>, vector<8x128xf32>,
    %c0_81 = arith.constant 0 : index
    %c0_82 = arith.constant 0 : index
    %271 = vector.load %arg8[%c0_81, %c0_82] : memref<8x128xf32, #tpu.memory_space<vmem>>, vector<8x128xf32>
    tpu.vector_store %arg8[%c0_81, %c0_82], %267 {strides = array<i32>} : memref<8x128xf32, #tpu.memory_space<vmem>>, vector<8x128xf32>,
    %c0_i32_83 = arith.constant 0 : i32
    %272 = arith.cmpi eq, %arg1, %c0_i32_83 : i32
    %273 = arith.extui %272 : i1 to i32
    %c0_i32_84 = arith.constant 0 : i32
    %274 = arith.cmpi ne, %273, %c0_i32_84 : i32
    scf.if %274 {
      %c0_85 = arith.constant 0 : index
      %c0_86 = arith.constant 0 : index
      %275 = vector.load %arg7[%c0_85, %c0_86] : memref<8x128xf32, #tpu.memory_space<vmem>>, vector<8x128xf32>
      %c0_87 = arith.constant 0 : index
      %c0_88 = arith.constant 0 : index
      %276 = vector.load %arg6[%c0_87, %c0_88] : memref<8x128xf32, #tpu.memory_space<vmem>>, vector<8x128xf32>
      tpu.vector_store %arg6[%c0_87, %c0_88], %275 {strides = array<i32>} : memref<8x128xf32, #tpu.memory_space<vmem>>, vector<8x128xf32>,
    } else {
    }
    return
  }
  func.func @transform_0(%arg0: i32, %arg1: i32) -> (i32, i32, i32) {
    %c0_i32 = arith.constant 0 : i32
    %c0_i32_0 = arith.constant 0 : i32
    return %arg1, %arg0, %c0_i32 : i32, i32, i32
  }
  func.func @transform_1(%arg0: i32, %arg1: i32) -> (i32, i32) {
    %c0_i32 = arith.constant 0 : i32
    %c0_i32_0 = arith.constant 0 : i32
    %c0_i32_1 = arith.constant 0 : i32
    return %c0_i32, %c0_i32_0 : i32, i32
  }
  func.func @transform_2(%arg0: i32, %arg1: i32) -> (i32, i32) {
    %c0_i32 = arith.constant 0 : i32
    %c0_i32_0 = arith.constant 0 : i32
    %c0_i32_1 = arith.constant 0 : i32
    return %c0_i32, %c0_i32_0 : i32, i32
  }
  func.func @transform_3(%arg0: i32, %arg1: i32) -> (i32, i32) {
    %c0_i32 = arith.constant 0 : i32
    %c0_i32_0 = arith.constant 0 : i32
    %c0_i32_1 = arith.constant 0 : i32
    return %c0_i32, %c0_i32_0 : i32, i32
  }
  func.func @transform_4(%arg0: i32, %arg1: i32) -> (i32, i32) {
    %c0_i32 = arith.constant 0 : i32
    %c0_i32_0 = arith.constant 0 : i32
    return %arg0, %c0_i32 : i32, i32
  }
}

</mosaic_0001>

<bundles_post_ra>
// kernel: tpu_custom_call.1
= control target key start
LH: loop header
LB: loop body
LE: loop exit
PB: predicated region body
PF: predicated region fallthrough
CT: control target
= control target key end

     0   :  { %9 = vsyncpa [#allocation6], 0  ;;  %s2824_s0 = inlined_call_operand.hbm [shape: bf16[8,8,128], index: 0, kind: input, shape index: {}]   ;;  %s2825_s1 = inlined_call_operand.hbm [shape: bf16[128,512], index: 1, kind: input, shape index: {}]   ;;  %s2826_s2 = inlined_call_operand.hbm [shape: bf16[128,512], index: 2, kind: input, shape index: {}]   ;;  %s2827_s3 = inlined_call_operand.hbm [shape: f32[1,512], index: 3, kind: input, shape index: {}]   ;;  %s2828_s4 = inlined_call_operand.hbm [shape: f32[8,128], index: 4, kind: output, shape index: {}]  }
   0x1   :  { %10 = vsyncpa [#allocation9], 0 }
   0x2   :  { %11 = vsyncpa [#allocation12], 0  ;;  %s30_s17 = sshll.u32 %s2825_s1, 4  ;;  %s31_s17 = int_to_ptr.hbm [resolvable:$true] %s30_s17 }
   0x3   :  { %12 = vsyncpa [#allocation7], 0  ;;  %s2316_s18 = smov [#allocation8]   ;;  %s17_s22 = sshll.u32 %s2824_s0, 4  ;;  %s18_s22 = int_to_ptr.hbm [resolvable:$true] %s17_s22 }
   0x4   :  { %s32_s19 = sshll.u32 %s2316_s18, 4  ;;  %s2317_s23 = smov 256   ;;  %s33_s19 = int_to_ptr.vmem [resolvable:$true] %s32_s19 }
   0x5   :  { %s2318_s24 = smov 16   ;;  %s2319_s25 = smov [#allocation5]  }
   0x6   :  { %38 = dma.hbm_to_vmem [thread:$0]  %s31_s17, 4096, %s33_s19, [#allocation9], %s2317_s23, %s2317_s23, %s2318_s24  }
   0x7   :  { %s19_s26 = sshll.u32 %s2319_s25, 4  ;;  %s2320_s27 = smov 64   ;;  %s20_s26 = int_to_ptr.vmem [resolvable:$true] %s19_s26 }
   0x8   :  { %s2321_s28 = smov 4   ;;  %s43_s30 = sshll.u32 %s2826_s2, 4  ;;  %s44_s30 = int_to_ptr.hbm [resolvable:$true] %s43_s30 }
   0x9   :  { %25 = dma.hbm_to_vmem [thread:$0]  %s18_s22, 512, %s20_s26, [#allocation6], %s2320_s27, %s2320_s27, %s2321_s28  }
   0xa   :  { %s2322_s5 = smov [#allocation10]   ;;  %s57_s8 = sshll.u32 %s2827_s3, 4  ;;  %s58_s8 = int_to_ptr.hbm [resolvable:$true] %s57_s8 }
   0xb   :  { %s45_s6 = sshll.u32 %s2322_s5, 4  ;;  %s2323_s9 = smov [#allocation11]   ;;  %s46_s6 = int_to_ptr.vmem [resolvable:$true] %s45_s6 }
   0xc   :  { %51 = dma.hbm_to_vmem [thread:$0]  %s44_s30, 4096, %s46_s6, [#allocation9], %s2317_s23, %s2317_s23, %s2318_s24  }
   0xd   :  { %s59_s10 = sshll.u32 %s2323_s9, 4  ;;  %s60_s10 = int_to_ptr.vmem [resolvable:$true] %s59_s10 }
   0xe   :  { %62 = dma.hbm_to_vmem [thread:$0]  %s58_s8, 64, %s60_s10, [#allocation12]  }
   0xf   :  { %2308 = dma.done.wait [#allocation6], 512  }
  0x10   :  { %2309 = vsyncadd [#allocation6], 4294966784 }
  0x11   :  { %2310 = dma.done.wait [#allocation9], 8192  }
  0x12   :  { %2311 = vsyncadd [#allocation9], 4294959104 }
  0x13   :  { %2312 = dma.done.wait [#allocation12], 64  }
  0x14   :  { %2313 = vsyncadd [#allocation12], 4294967232  ;;  %v1816_v0 = vld [vmem:[#allocation8 + $0xe0] sm:$0xf]  ;;  %v2016_v1 = vld [vmem:[#allocation8 + $0xec] sm:$0xf0] }
  0x15   :  { %v2014_v2 = vld [vmem:[#allocation8 + $0xe4] sm:$0xf]  ;;  %v1817_v3 = vor.u32 %v2016_v1, %v1816_v0  ;;  %v1818_v4 = vld [vmem:[#allocation8 + $0xf0] sm:$0xf0]  ;;  %v1824_v5 = vld [vmem:[#allocation8 + $0xe8] sm:$0xf] }
  0x16   :  { %v2017_v6 = vld [vmem:[#allocation8 + $0xf4] sm:$0xf0]  ;;  %v1821_v7 = vor.u32 %v2014_v2, %v1818_v4  ;;  %v2015_v9 = vld [vmem:[#allocation8 + $0xec] sm:$0xf]  ;;  %v1826_v10 = vld [vmem:[#allocation8 + $0xf8] sm:$0xf0] }
  0x17   :  { %v1825_v8 = vor.u32 %v2017_v6, %v1824_v5  ;;  %v1800_v11 = vld [vmem:[#allocation8 + $0xc0] sm:$0xf]  ;;  %319 = vmatpush.bf16.msra.mxu0 %v1817_v3  ;;  %v1829_v12 = vor.u32 %v2015_v9, %v1826_v10  ;;  %v2012_v13 = vld [vmem:[#allocation8 + $0xcc] sm:$0xf0]  ;;  %v2010_v14 = vld [vmem:[#allocation8 + $0xc4] sm:$0xf] }
  0x18   :  { %v1802_v15 = vld [vmem:[#allocation8 + $0xd0] sm:$0xf0]  ;;  %348 = vmatpush.bf16.msra.mxu1 %v1821_v7  ;;  %v1801_v16 = vor.u32 %v2012_v13, %v1800_v11  ;;  %v1808_v18 = vld [vmem:[#allocation8 + $0xc8] sm:$0xf]  ;;  %v2013_v19 = vld [vmem:[#allocation8 + $0xd4] sm:$0xf0] }
  0x19   :  { %377 = vmatpush.bf16.msra.mxu2 %v1825_v8  ;;  %v1805_v17 = vor.u32 %v2010_v14, %v1802_v15  ;;  %v2011_v20 = vld [vmem:[#allocation8 + $0xcc] sm:$0xf]  ;;  %406 = vmatpush.bf16.msra.mxu3 %v1829_v12  ;;  %v1809_v21 = vor.u32 %v2013_v19, %v1808_v18  ;;  %v1810_v22 = vld [vmem:[#allocation8 + $0xd8] sm:$0xf0]  ;;  %v1784_v23 = vld [vmem:[#allocation8 + $0xa0] sm:$0xf] }
  0x1a   :  { %v2008_v24 = vld [vmem:[#allocation8 + $0xac] sm:$0xf0]  ;;  %v1813_v25 = vor.u32 %v2011_v20, %v1810_v22  ;;  %v2006_v26 = vld [vmem:[#allocation8 + $0xa4] sm:$0xf]  ;;  %v1786_v27 = vld [vmem:[#allocation8 + $0xb0] sm:$0xf0] }
  0x1b   :  { %v1792_v28 = vld [vmem:[#allocation8 + $0xa8] sm:$0xf]  ;;  %320 = vmatpush.bf16.msra.mxu0 %v1801_v16  ;;  %v1785_v29 = vor.u32 %v2008_v24, %v1784_v23  ;;  %v2009_v30 = vld [vmem:[#allocation8 + $0xb4] sm:$0xf0]  ;;  %v2007_v31 = vld [vmem:[#allocation8 + $0xac] sm:$0xf]  ;;  %v1789_v33 = vor.u32 %v2006_v26, %v1786_v27 }
  0x1c   :  { %v1794_v32 = vld [vmem:[#allocation8 + $0xb8] sm:$0xf0]  ;;  %349 = vmatpush.bf16.msra.mxu1 %v1805_v17  ;;  %v1793_v34 = vor.u32 %v2009_v30, %v1792_v28  ;;  %v1768_v35 = vld [vmem:[#allocation8 + $0x80] sm:$0xf]  ;;  %v2004_v36 = vld [vmem:[#allocation8 + $0x8c] sm:$0xf0] }
  0x1d   :  { %378 = vmatpush.bf16.msra.mxu2 %v1809_v21  ;;  %v2002_v37 = vld [vmem:[#allocation8 + $0x84] sm:$0xf]  ;;  %407 = vmatpush.bf16.msra.mxu3 %v1813_v25  ;;  %v1797_v38 = vor.u32 %v2007_v31, %v1794_v32  ;;  %v1770_v39 = vld [vmem:[#allocation8 + $0x90] sm:$0xf0]  ;;  %v1776_v40 = vld [vmem:[#allocation8 + $0x88] sm:$0xf]  ;;  %v1769_v44 = vor.u32 %v2004_v36, %v1768_v35 }
  0x1e   :  { %v2005_v41 = vld [vmem:[#allocation8 + $0x94] sm:$0xf0]  ;;  %v2003_v42 = vld [vmem:[#allocation8 + $0x8c] sm:$0xf]  ;;  %v1778_v43 = vld [vmem:[#allocation8 + $0x98] sm:$0xf0]  ;;  %v1773_v45 = vor.u32 %v2002_v37, %v1770_v39 }
  0x1f   :  { %321 = vmatpush.bf16.msra.mxu0 %v1785_v29  ;;  %v1777_v46 = vor.u32 %v2005_v41, %v1776_v40  ;;  %v1752_v47 = vld [vmem:[#allocation8 + $0x60] sm:$0xf]  ;;  %v2000_v48 = vld [vmem:[#allocation8 + $0x6c] sm:$0xf0]  ;;  %v1998_v49 = vld [vmem:[#allocation8 + $0x64] sm:$0xf]  ;;  %v1781_v50 = vor.u32 %v2003_v42, %v1778_v43 }
  0x20   :  { %350 = vmatpush.bf16.msra.mxu1 %v1789_v33  ;;  %v1754_v51 = vld [vmem:[#allocation8 + $0x70] sm:$0xf0]  ;;  %v1760_v52 = vld [vmem:[#allocation8 + $0x68] sm:$0xf]  ;;  %v2001_v53 = vld [vmem:[#allocation8 + $0x74] sm:$0xf0]  ;;  %v1753_v56 = vor.u32 %v2000_v48, %v1752_v47 }
  0x21   :  { %379 = vmatpush.bf16.msra.mxu2 %v1793_v34  ;;  %408 = vmatpush.bf16.msra.mxu3 %v1797_v38  ;;  %v1999_v54 = vld [vmem:[#allocation8 + $0x6c] sm:$0xf]  ;;  %v1762_v55 = vld [vmem:[#allocation8 + $0x78] sm:$0xf0]  ;;  %v1757_v57 = vor.u32 %v1998_v49, %v1754_v51  ;;  %v1761_v58 = vor.u32 %v2001_v53, %v1760_v52  ;;  %v1736_v59 = vld [vmem:[#allocation8 + $0x40] sm:$0xf] }
  0x22   :  { %v1996_v60 = vld [vmem:[#allocation8 + $0x4c] sm:$0xf0]  ;;  %v1994_v61 = vld [vmem:[#allocation8 + $0x44] sm:$0xf]  ;;  %v1765_v62 = vor.u32 %v1999_v54, %v1762_v55  ;;  %v1738_v63 = vld [vmem:[#allocation8 + $0x50] sm:$0xf0] }
  0x23   :  { %322 = vmatpush.bf16.msra.mxu0 %v1769_v44  ;;  %v1744_v0 = vld [vmem:[#allocation8 + $0x48] sm:$0xf]  ;;  %v1997_v1 = vld [vmem:[#allocation8 + $0x54] sm:$0xf0]  ;;  %v1995_v2 = vld [vmem:[#allocation8 + $0x4c] sm:$0xf]  ;;  %v1737_v4 = vor.u32 %v1996_v60, %v1736_v59  ;;  %v1741_v5 = vor.u32 %v1994_v61, %v1738_v63 }
  0x24   :  { %351 = vmatpush.bf16.msra.mxu1 %v1773_v45  ;;  %v1746_v3 = vld [vmem:[#allocation8 + $0x58] sm:$0xf0]  ;;  %v1745_v6 = vor.u32 %v1997_v1, %v1744_v0  ;;  %v1720_v7 = vld [vmem:[#allocation8 + $0x20] sm:$0xf]  ;;  %v1992_v8 = vld [vmem:[#allocation8 + $0x2c] sm:$0xf0] }
  0x25   :  { %380 = vmatpush.bf16.msra.mxu2 %v1777_v46  ;;  %409 = vmatpush.bf16.msra.mxu3 %v1781_v50  ;;  %v1990_v9 = vld [vmem:[#allocation8 + $0x24] sm:$0xf]  ;;  %v1749_v10 = vor.u32 %v1995_v2, %v1746_v3  ;;  %v1722_v11 = vld [vmem:[#allocation8 + $0x30] sm:$0xf0]  ;;  %v1728_v12 = vld [vmem:[#allocation8 + $0x28] sm:$0xf]  ;;  %v1721_v16 = vor.u32 %v1992_v8, %v1720_v7 }
  0x26   :  { %v1993_v13 = vld [vmem:[#allocation8 + $0x34] sm:$0xf0]  ;;  %v1991_v14 = vld [vmem:[#allocation8 + $0x2c] sm:$0xf]  ;;  %v1730_v15 = vld [vmem:[#allocation8 + $0x38] sm:$0xf0]  ;;  %v1725_v18 = vor.u32 %v1990_v9, %v1722_v11 }
  0x27   :  { %323 = vmatpush.bf16.msra.mxu0 %v1753_v56  ;;  %v1704_v17 = vld [vmem:[#allocation8] sm:$0xf]  ;;  %v1729_v19 = vor.u32 %v1993_v13, %v1728_v12  ;;  %v1988_v20 = vld [vmem:[#allocation8 + $0xc] sm:$0xf0]  ;;  %v1986_v21 = vld [vmem:[#allocation8 + $0x4] sm:$0xf]  ;;  %v1733_v23 = vor.u32 %v1991_v14, %v1730_v15 }
  0x28   :  { %352 = vmatpush.bf16.msra.mxu1 %v1757_v57  ;;  %v1706_v22 = vld [vmem:[#allocation8 + $0x10] sm:$0xf0]  ;;  %v1712_v24 = vld [vmem:[#allocation8 + $0x8] sm:$0xf]  ;;  %v1989_v25 = vld [vmem:[#allocation8 + $0x14] sm:$0xf0]  ;;  %v1705_v30 = vor.u32 %v1988_v20, %v1704_v17 }
  0x29   :  { %381 = vmatpush.bf16.msra.mxu2 %v1761_v58  ;;  %410 = vmatpush.bf16.msra.mxu3 %v1765_v62  ;;  %v1987_v26 = vld [vmem:[#allocation8 + $0xc] sm:$0xf]  ;;  %v1714_v27 = vld [vmem:[#allocation8 + $0x18] sm:$0xf0]  ;;  %v1944_v28 = vld [vmem:[#allocation10 + $0xe0] sm:$0xf]  ;;  %v1709_v33 = vor.u32 %v1986_v21, %v1706_v22  ;;  %v1713_v34 = vor.u32 %v1989_v25, %v1712_v24 }
  0x2a   :  { %v2048_v29 = vld [vmem:[#allocation10 + $0xec] sm:$0xf0]  ;;  %v2046_v31 = vld [vmem:[#allocation10 + $0xe4] sm:$0xf]  ;;  %v1946_v32 = vld [vmem:[#allocation10 + $0xf0] sm:$0xf0]  ;;  %v1717_v36 = vor.u32 %v1987_v26, %v1714_v27 }
  0x2b   :  { %324 = vmatpush.bf16.msra.mxu0 %v1737_v4  ;;  %v1982_v35 = vld [vmem:[#allocation5] sm:$0xff]  ;;  %v2363_v37 = vor.u32 %v2048_v29, %v1944_v28  ;;  %v2047_v38 = vld [vmem:[#allocation10 + $0xec] sm:$0xf]  ;;  %v1952_v39 = vld [vmem:[#allocation10 + $0xe8] sm:$0xf]  ;;  %v2365_v41 = vor.u32 %v2046_v31, %v1946_v32  ;;  %s2325_s2 = smov [#allocation13]  }
  0x2c   :  { %353 = vmatpush.bf16.msra.mxu1 %v1741_v5  ;;  %v2049_v40 = vld [vmem:[#allocation10 + $0xf4] sm:$0xf0]  ;;  %v1954_v42 = vld [vmem:[#allocation10 + $0xf8] sm:$0xf0]  ;;  %v1928_v43 = vld [vmem:[#allocation10 + $0xc0] sm:$0xf] }
  0x2d   :  { %382 = vmatpush.bf16.msra.mxu2 %v1745_v6  ;;  %411 = vmatpush.bf16.msra.mxu3 %v1749_v10  ;;  %v2044_v44 = vld [vmem:[#allocation10 + $0xcc] sm:$0xf0]  ;;  %v2042_v45 = vld [vmem:[#allocation10 + $0xc4] sm:$0xf]  ;;  %v1930_v46 = vld [vmem:[#allocation10 + $0xd0] sm:$0xf0]  ;;  %v2367_v47 = vor.u32 %v2049_v40, %v1952_v39  ;;  %v2370_v48 = vor.u32 %v2047_v38, %v1954_v42 }
  0x2e   :  { %v2372_v49 = vor.u32 %v2044_v44, %v1928_v43  ;;  %v2043_v50 = vld [vmem:[#allocation10 + $0xcc] sm:$0xf]  ;;  %v1936_v51 = vld [vmem:[#allocation10 + $0xc8] sm:$0xf]  ;;  %v2045_v52 = vld [vmem:[#allocation10 + $0xd4] sm:$0xf0]  ;;  %v2375_v53 = vor.u32 %v2042_v45, %v1930_v46 }
  0x2f   :  { %325 = vmatpush.bf16.msra.mxu0 %v1721_v16  ;;  %v1938_v54 = vld [vmem:[#allocation10 + $0xd8] sm:$0xf0]  ;;  %v1912_v55 = vld [vmem:[#allocation10 + $0xa0] sm:$0xf]  ;;  %v2040_v56 = vld [vmem:[#allocation10 + $0xac] sm:$0xf0]  ;;  %v2378_v59 = vor.u32 %v2045_v52, %v1936_v51 }
  0x30   :  { %354 = vmatpush.bf16.msra.mxu1 %v1725_v18  ;;  %v2038_v57 = vld [vmem:[#allocation10 + $0xa4] sm:$0xf]  ;;  %v1914_v58 = vld [vmem:[#allocation10 + $0xb0] sm:$0xf0]  ;;  %v2382_v60 = vor.u32 %v2043_v50, %v1938_v54  ;;  %v2384_v61 = vor.u32 %v2040_v56, %v1912_v55  ;;  %v2039_v62 = vld [vmem:[#allocation10 + $0xac] sm:$0xf] }
  0x31   :  { %383 = vmatpush.bf16.msra.mxu2 %v1729_v19  ;;  %412 = vmatpush.bf16.msra.mxu3 %v1733_v23  ;;  %v1920_v63 = vld [vmem:[#allocation10 + $0xa8] sm:$0xf]  ;;  %v2041_v0 = vld [vmem:[#allocation10 + $0xb4] sm:$0xf0]  ;;  %v2387_v1 = vor.u32 %v2038_v57, %v1914_v58  ;;  %v1922_v2 = vld [vmem:[#allocation10 + $0xb8] sm:$0xf0] }
  0x32   :  { %v1896_v3 = vld [vmem:[#allocation10 + $0x80] sm:$0xf]  ;;  %v2036_v4 = vld [vmem:[#allocation10 + $0x8c] sm:$0xf0]  ;;  %v2034_v5 = vld [vmem:[#allocation10 + $0x84] sm:$0xf]  ;;  %v2390_v7 = vor.u32 %v2041_v0, %v1920_v63  ;;  %v2394_v8 = vor.u32 %v2039_v62, %v1922_v2 }
  0x33   :  { %326 = vmatpush.bf16.msra.mxu0 %v1705_v30  ;;  %v1898_v6 = vld [vmem:[#allocation10 + $0x90] sm:$0xf0]  ;;  %v2396_v9 = vor.u32 %v2036_v4, %v1896_v3  ;;  %v2035_v10 = vld [vmem:[#allocation10 + $0x8c] sm:$0xf]  ;;  %v1904_v11 = vld [vmem:[#allocation10 + $0x88] sm:$0xf] }
  0x34   :  { %355 = vmatpush.bf16.msra.mxu1 %v1709_v33  ;;  %v2037_v12 = vld [vmem:[#allocation10 + $0x94] sm:$0xf0]  ;;  %v2399_v13 = vor.u32 %v2034_v5, %v1898_v6  ;;  %v1906_v14 = vld [vmem:[#allocation10 + $0x98] sm:$0xf0]  ;;  %v1880_v15 = vld [vmem:[#allocation10 + $0x60] sm:$0xf] }
  0x35   :  { %384 = vmatpush.bf16.msra.mxu2 %v1713_v34  ;;  %413 = vmatpush.bf16.msra.mxu3 %v1717_v36  ;;  %v2032_v16 = vld [vmem:[#allocation10 + $0x6c] sm:$0xf0]  ;;  %v2030_v17 = vld [vmem:[#allocation10 + $0x64] sm:$0xf]  ;;  %v1882_v18 = vld [vmem:[#allocation10 + $0x70] sm:$0xf0]  ;;  %v2402_v20 = vor.u32 %v2037_v12, %v1904_v11  ;;  %v2406_v21 = vor.u32 %v2035_v10, %v1906_v14 }
  0x36   :  { %327 = vmatmul.bf16.vlgmr.msra.gmra.mxu0 %v1982_v35  ;;  %v1983_v19 = vld [vmem:[#allocation5 + $0x8] sm:$0xff]  ;;  %v2408_v22 = vor.u32 %v2032_v16, %v1880_v15  ;;  %v2033_v25 = vld [vmem:[#allocation10 + $0x74] sm:$0xf0]  ;;  %v2411_v26 = vor.u32 %v2030_v17, %v1882_v18  ;;  %v1890_v27 = vld [vmem:[#allocation10 + $0x78] sm:$0xf0]  ;;  %v2324_v18 = vmov 0.0|0.0  }
  0x37   :  { %666 = vmatpush.bf16.msrb.mxu0 %v2363_v37  ;;  %356 = vmatmul.bf16.vlgmr.msra.gmra.mxu1 %v1982_v35  ;;  %v2031_v23 = vld [vmem:[#allocation10 + $0x6c] sm:$0xf]  ;;  %v1888_v24 = vld [vmem:[#allocation10 + $0x68] sm:$0xf]  ;;  %v1864_v28 = vld [vmem:[#allocation10 + $0x40] sm:$0xf] }
  0x38   :  { %679 = vmatpush.bf16.msrb.mxu1 %v2365_v41  ;;  %385 = vmatmul.bf16.vlgmr.msra.gmra.mxu2 %v1982_v35  ;;  %v2028_v29 = vld [vmem:[#allocation10 + $0x4c] sm:$0xf0]  ;;  %v2026_v30 = vld [vmem:[#allocation10 + $0x44] sm:$0xf]  ;;  %v1866_v31 = vld [vmem:[#allocation10 + $0x50] sm:$0xf0]  ;;  %v2414_v32 = vor.u32 %v2033_v25, %v1888_v24  ;;  %v2418_v33 = vor.u32 %v2031_v23, %v1890_v27 }
  0x39   :  { %414 = vmatmul.bf16.vlgmr.msra.gmra.mxu3 %v1982_v35  ;;  %692 = vmatpush.bf16.msrb.mxu2 %v2367_v47  ;;  %v2420_v34 = vor.u32 %v2028_v29, %v1864_v28  ;;  %v2423_v35 = vor.u32 %v2026_v30, %v1866_v31  ;;  %v2027_v36 = vld [vmem:[#allocation10 + $0x4c] sm:$0xf]  ;;  %v1874_v38 = vld [vmem:[#allocation10 + $0x58] sm:$0xf0]  ;;  %v1848_v39 = vld [vmem:[#allocation10 + $0x20] sm:$0xf] }
  0x3a   :  { %705 = vmatpush.bf16.msrb.mxu3 %v2370_v48  ;;  %v2024_v40 = vld [vmem:[#allocation10 + $0x2c] sm:$0xf0]  ;;  %v2022_v42 = vld [vmem:[#allocation10 + $0x24] sm:$0xf]  ;;  %v2428_v43 = vor.u32 %v2027_v36, %v1874_v38  ;;  %v1850_v45 = vld [vmem:[#allocation10 + $0x30] sm:$0xf0] }
  0x3b   :  { %667 = vmatpush.bf16.msrb.mxu0 %v2372_v49  ;;  %v2430_v44 = vor.u32 %v2024_v40, %v1848_v39  ;;  %v1872_v46 = vld [vmem:[#allocation10 + $0x48] sm:$0xf]  ;;  %v2029_v50 = vld [vmem:[#allocation10 + $0x54] sm:$0xf0]  ;;  %v2433_v51 = vor.u32 %v2022_v42, %v1850_v45  ;;  %v2023_v54 = vld [vmem:[#allocation10 + $0x2c] sm:$0xf] }
  0x3c   :  { %680 = vmatpush.bf16.msrb.mxu1 %v2375_v53  ;;  %v2435_v52 = vor.u32 %v2029_v50, %v1872_v46  ;;  %v1858_v55 = vld [vmem:[#allocation10 + $0x38] sm:$0xf0]  ;;  %v1832_v56 = vld [vmem:[#allocation10] sm:$0xf]  ;;  %v2020_v57 = vld [vmem:[#allocation10 + $0xc] sm:$0xf0] }
  0x3d   :  { %693 = vmatpush.bf16.msrb.mxu2 %v2378_v59  ;;  %v2018_v58 = vld [vmem:[#allocation10 + $0x4] sm:$0xf]  ;;  %v1834_v62 = vld [vmem:[#allocation10 + $0x10] sm:$0xf0]  ;;  %v1856_v63 = vld [vmem:[#allocation10 + $0x28] sm:$0xf]  ;;  %v2440_v2 = vor.u32 %v2023_v54, %v1858_v55  ;;  %v2442_v3 = vor.u32 %v2020_v57, %v1832_v56 }
  0x3e   :  { %706 = vmatpush.bf16.msrb.mxu3 %v2382_v60  ;;  %v2025_v0 = vld [vmem:[#allocation10 + $0x34] sm:$0xf0]  ;;  %v1840_v5 = vld [vmem:[#allocation10 + $0x8] sm:$0xf]  ;;  %v2447_v10 = vor.u32 %v2018_v58, %v1834_v62  ;;  %v2019_v11 = vld [vmem:[#allocation10 + $0xc] sm:$0xf] }
  0x3f   :  { %668 = vmatpush.bf16.msrb.mxu0 %v2384_v61  ;;  %v2444_v4 = vor.u32 %v2025_v0, %v1856_v63  ;;  %v2021_v6 = vld [vmem:[#allocation10 + $0x14] sm:$0xf0]  ;;  %v1842_v12 = vld [vmem:[#allocation10 + $0x18] sm:$0xf0]  ;;  %v1984_v16 = vld [vmem:[#allocation5 + $0x10] sm:$0xff]  ;;  %s1672_s3 = sshll.u32 %s2325_s2, 4  ;;  %s1673_s3 = int_to_ptr.vmem [resolvable:$true] %s1672_s3 }
  0x40   :  { %681 = vmatpush.bf16.msrb.mxu1 %v2387_v1  ;;  %v2450_v14 = vor.u32 %v2021_v6, %v1840_v5  ;;  %v2454_v15 = vor.u32 %v2019_v11, %v1842_v12  ;;  %v1985_v17 = vld [vmem:[#allocation5 + $0x18] sm:$0xff]  ;;  %v125_v24 = vld [vmem:[#allocation11] sm:$0xf]  ;;  %s1674_s13 = sshll.u32 %s2828_s4, 4  ;;  %s1675_s13 = int_to_ptr.hbm [resolvable:$true] %s1674_s13 }
  0x41   :  { %694 = vmatpush.bf16.msrb.mxu2 %v2390_v7  ;;  %v127_v25 = vperm.slane %v125_v24, 0  ;;  %v128_v28 = vperm.slane %v125_v24, 1  ;;  %v2531_v39 = vperm.slane %v125_v24, 2  ;;  %v2533_v40 = vperm.slane %v125_v24, 3 }
  0x42   :  { %707 = vmatpush.bf16.msrb.mxu3 %v2394_v8 }
  0x43   :  { %669 = vmatpush.bf16.msrb.mxu0 %v2396_v9 }
  0x44   :  { %682 = vmatpush.bf16.msrb.mxu1 %v2399_v13 }
  0x45   :  { %695 = vmatpush.bf16.msrb.mxu2 %v2402_v20 }
  0x46   :  { %708 = vmatpush.bf16.msrb.mxu3 %v2406_v21  ;;  %332 = vmatmul.bf16.gmra.mxu0 %v1983_v19 }
  0x47   :  { %670 = vmatpush.bf16.msrb.mxu0 %v2408_v22  ;;  %361 = vmatmul.bf16.gmra.mxu1 %v1983_v19 }
  0x48   :  { %683 = vmatpush.bf16.msrb.mxu1 %v2411_v26  ;;  %390 = vmatmul.bf16.gmra.mxu2 %v1983_v19 }
  0x49   :  { %419 = vmatmul.bf16.gmra.mxu3 %v1983_v19  ;;  %696 = vmatpush.bf16.msrb.mxu2 %v2414_v32 }
  0x4a   :  { %709 = vmatpush.bf16.msrb.mxu3 %v2418_v33 }
  0x4b   :  { %671 = vmatpush.bf16.msrb.mxu0 %v2420_v34 }
  0x4c   :  { %684 = vmatpush.bf16.msrb.mxu1 %v2423_v35 }
  0x4d   :  { %697 = vmatpush.bf16.msrb.mxu2 %v2435_v52 }
  0x4e   :  { %710 = vmatpush.bf16.msrb.mxu3 %v2428_v43 }
  0x4f   :  { %672 = vmatpush.bf16.msrb.mxu0 %v2430_v44 }
  0x50   :  { %685 = vmatpush.bf16.msrb.mxu1 %v2433_v51 }
  0x51   :  { %698 = vmatpush.bf16.msrb.mxu2 %v2444_v4 }
  0x52   :  { %711 = vmatpush.bf16.msrb.mxu3 %v2440_v2 }
  0x53   :  { %673 = vmatpush.bf16.msrb.mxu0 %v2442_v3 }
  0x54   :  { %686 = vmatpush.bf16.msrb.mxu1 %v2447_v10 }
  0x55   :  { %699 = vmatpush.bf16.msrb.mxu2 %v2450_v14 }
  0x56   :  { %712 = vmatpush.bf16.msrb.mxu3 %v2454_v15  ;;  %337 = vmatmul.bf16.gmra.mxu0 %v1984_v16 }
  0x57   :  { %791 = vmatpush.bf16.msra.mxu0 %v2363_v37  ;;  %366 = vmatmul.bf16.gmra.mxu1 %v1984_v16 }
  0x58   :  { %804 = vmatpush.bf16.msra.mxu1 %v2365_v41  ;;  %395 = vmatmul.bf16.gmra.mxu2 %v1984_v16 }
  0x59   :  { %817 = vmatpush.bf16.msra.mxu2 %v2367_v47  ;;  %424 = vmatmul.bf16.gmra.mxu3 %v1984_v16 }
  0x5a   :  { %830 = vmatpush.bf16.msra.mxu3 %v2370_v48 }
  0x5b   :  { %792 = vmatpush.bf16.msra.mxu0 %v2372_v49 }
  0x5c   :  { %805 = vmatpush.bf16.msra.mxu1 %v2375_v53 }
  0x5d   :  { %818 = vmatpush.bf16.msra.mxu2 %v2378_v59 }
  0x5e   :  { %831 = vmatpush.bf16.msra.mxu3 %v2382_v60 }
  0x5f   :  { %793 = vmatpush.bf16.msra.mxu0 %v2384_v61 }
  0x60   :  { %806 = vmatpush.bf16.msra.mxu1 %v2387_v1 }
  0x61   :  { %819 = vmatpush.bf16.msra.mxu2 %v2390_v7 }
  0x62   :  { %832 = vmatpush.bf16.msra.mxu3 %v2394_v8 }
  0x63   :  { %794 = vmatpush.bf16.msra.mxu0 %v2396_v9 }
  0x64   :  { %807 = vmatpush.bf16.msra.mxu1 %v2399_v13 }
  0x65   :  { %820 = vmatpush.bf16.msra.mxu2 %v2402_v20 }
  0x66   :  { %833 = vmatpush.bf16.msra.mxu3 %v2406_v21  ;;  %342 = vmatmul.bf16.gmra.mxu0 %v1985_v17 }
  0x67   :  { %795 = vmatpush.bf16.msra.mxu0 %v2408_v22  ;;  %371 = vmatmul.bf16.gmra.mxu1 %v1985_v17 }
  0x68   :  { %808 = vmatpush.bf16.msra.mxu1 %v2411_v26  ;;  %400 = vmatmul.bf16.gmra.mxu2 %v1985_v17 }
  0x69   :  { %821 = vmatpush.bf16.msra.mxu2 %v2414_v32  ;;  %429 = vmatmul.bf16.gmra.mxu3 %v1985_v17 }
  0x6a   :  { %834 = vmatpush.bf16.msra.mxu3 %v2418_v33 }
  0x6b   :  { %796 = vmatpush.bf16.msra.mxu0 %v2420_v34 }
  0x6c   :  { %809 = vmatpush.bf16.msra.mxu1 %v2423_v35 }
  0x6d   :  { %822 = vmatpush.bf16.msra.mxu2 %v2435_v52 }
  0x6e   :  { %835 = vmatpush.bf16.msra.mxu3 %v2428_v43 }
  0x6f   :  { %797 = vmatpush.bf16.msra.mxu0 %v2430_v44 }
  0x70   :  { %810 = vmatpush.bf16.msra.mxu1 %v2433_v51 }
  0x71   :  { %823 = vmatpush.bf16.msra.mxu2 %v2444_v4 }
  0x72   :  { %836 = vmatpush.bf16.msra.mxu3 %v2440_v2 }
  0x73   :  { %798 = vmatpush.bf16.msra.mxu0 %v2442_v3 }
  0x74   :  { %811 = vmatpush.bf16.msra.mxu1 %v2447_v10 }
  0x75   :  { %824 = vmatpush.bf16.msra.mxu2 %v2450_v14 }
  0x76   :  { %837 = vmatpush.bf16.msra.mxu3 %v2454_v15  ;;  %674 = vmatmul.bf16.vlgmr.msrb.gmra.mxu0 %v2324_v18 }
  0x77   :  { %687 = vmatmul.bf16.vlgmr.msrb.gmra.mxu1 %v2324_v18  ;;  %916 = vmatpush.bf16.msrb.mxu0 %v2363_v37 }
  0x78   :  { %700 = vmatmul.bf16.vlgmr.msrb.gmra.mxu2 %v2324_v18  ;;  %929 = vmatpush.bf16.msrb.mxu1 %v2365_v41 }
  0x79   :  { %713 = vmatmul.bf16.vlgmr.msrb.gmra.mxu3 %v2324_v18  ;;  %942 = vmatpush.bf16.msrb.mxu2 %v2367_v47 }
  0x7a   :  { %955 = vmatpush.bf16.msrb.mxu3 %v2370_v48 }
  0x7b   :  { %917 = vmatpush.bf16.msrb.mxu0 %v2372_v49 }
  0x7c   :  { %930 = vmatpush.bf16.msrb.mxu1 %v2375_v53 }
  0x7d   :  { %943 = vmatpush.bf16.msrb.mxu2 %v2378_v59 }
  0x7e   :  { %956 = vmatpush.bf16.msrb.mxu3 %v2382_v60 }
  0x7f   :  { %918 = vmatpush.bf16.msrb.mxu0 %v2384_v61 }
  0x80   :  { %931 = vmatpush.bf16.msrb.mxu1 %v2387_v1 }
  0x81   :  { %944 = vmatpush.bf16.msrb.mxu2 %v2390_v7 }
  0x82   :  { %957 = vmatpush.bf16.msrb.mxu3 %v2394_v8 }
  0x83   :  { %919 = vmatpush.bf16.msrb.mxu0 %v2396_v9 }
  0x84   :  { %932 = vmatpush.bf16.msrb.mxu1 %v2399_v13 }
  0x85   :  { %945 = vmatpush.bf16.msrb.mxu2 %v2402_v20 }
  0x86   :  { %958 = vmatpush.bf16.msrb.mxu3 %v2406_v21 }
  0x87   :  { %920 = vmatpush.bf16.msrb.mxu0 %v2408_v22 }
  0x88   :  { %933 = vmatpush.bf16.msrb.mxu1 %v2411_v26 }
  0x89   :  { %946 = vmatpush.bf16.msrb.mxu2 %v2414_v32 }
  0x8a   :  { %959 = vmatpush.bf16.msrb.mxu3 %v2418_v33 }
  0x8b   :  { %921 = vmatpush.bf16.msrb.mxu0 %v2420_v34 }
  0x8c   :  { %934 = vmatpush.bf16.msrb.mxu1 %v2423_v35 }
  0x8d   :  { %947 = vmatpush.bf16.msrb.mxu2 %v2435_v52 }
  0x8e   :  { %960 = vmatpush.bf16.msrb.mxu3 %v2428_v43 }
  0x8f   :  { %922 = vmatpush.bf16.msrb.mxu0 %v2430_v44 }
  0x90   :  { %935 = vmatpush.bf16.msrb.mxu1 %v2433_v51 }
  0x91   :  { %948 = vmatpush.bf16.msrb.mxu2 %v2444_v4 }
  0x92   :  { %961 = vmatpush.bf16.msrb.mxu3 %v2440_v2 }
  0x93   :  { %923 = vmatpush.bf16.msrb.mxu0 %v2442_v3 }
  0x94   :  { %936 = vmatpush.bf16.msrb.mxu1 %v2447_v10 }
  0x95   :  { %949 = vmatpush.bf16.msrb.mxu2 %v2450_v14 }
  0x96   :  { %962 = vmatpush.bf16.msrb.mxu3 %v2454_v15 }
  0xb3   :  { %v328_v19 = vpop.f32.mrf.mxu0 }
  0xb4   :  { %v357_v23 = vpop.f32.mrf.mxu1 }
  0xbb   :  { %v2523_v27 = vpop.f32.mrf.mxu2  ;;  %v330_v30 = vpop.f32.mrf.mxu0 }
  0xbc   :  { %v2525_v29 = vpop.f32.mrf.mxu3  ;;  %v2527_v31 = vadd.f32 %v330_v30, %v127_v25  ;;  %v359_v36 = vpop.f32.mrf.mxu1 }
  0xbd   :  { %v2529_v38 = vadd.f32 %v359_v36, %v128_v28 }
  0xc3   :  { %v388_v42 = vpop.f32.mrf.mxu2  ;;  %v333_v50 = vpop.f32.mrf.mxu0 }
  0xc4   :  { %v2536_v45 = vadd.f32 %v388_v42, %v2531_v39  ;;  %v417_v46 = vpop.f32.mrf.mxu3  ;;  %v2541_v55 = vadd.f32 %v333_v50, %v127_v25  ;;  %v362_v56 = vpop.f32.mrf.mxu1 }
  0xc5   :  { %v2539_v54 = vadd.f32 %v417_v46, %v2533_v40  ;;  %v2543_v57 = vadd.f32 %v362_v56, %v128_v28 }
  0xcb   :  { %v391_v58 = vpop.f32.mrf.mxu2  ;;  %v335_v0 = vpop.f32.mrf.mxu0 }
  0xcc   :  { %v2546_v62 = vadd.f32 %v391_v58, %v2531_v39  ;;  %v420_v63 = vpop.f32.mrf.mxu3  ;;  %v2551_v6 = vadd.f32 %v335_v0, %v127_v25  ;;  %v364_v11 = vpop.f32.mrf.mxu1 }
  0xcd   :  { %v2549_v5 = vadd.f32 %v420_v63, %v2533_v40  ;;  %v2553_v12 = vadd.f32 %v364_v11, %v128_v28 }
  0xce   :  { %2829 = vst [vmem:[#allocation18_spill] sm:$0xff] %v2546_v62 }
  0xcf   :  { %2830 = vst [vmem:[#allocation19_spill] sm:$0xff] %v2551_v6 }
  0xd0   :  { %2831 = vst [vmem:[#allocation20_spill] sm:$0xff] %v2553_v12 }
  0xd3   :  { %v393_v16 = vpop.f32.mrf.mxu2  ;;  %v338_v24 = vpop.f32.mrf.mxu0 }
  0xd4   :  { %v2556_v17 = vadd.f32 %v393_v16, %v2531_v39  ;;  %v422_v18 = vpop.f32.mrf.mxu3  ;;  %v2561_v36 = vadd.f32 %v338_v24, %v127_v25  ;;  %v367_v42 = vpop.f32.mrf.mxu1 }
  0xd5   :  { %v2559_v30 = vadd.f32 %v422_v18, %v2533_v40  ;;  %v2563_v46 = vadd.f32 %v367_v42, %v128_v28 }
  0xd6   :  { %2832 = vst [vmem:[#allocation21_spill] sm:$0xff] %v2556_v17 }
  0xd7   :  { %2833 = vst [vmem:[#allocation22_spill] sm:$0xff] %v2559_v30 }
  0xd8   :  { %2834 = vst [vmem:[#allocation23_spill] sm:$0xff] %v2561_v36 }
  0xd9   :  { %2835 = vst [vmem:[#allocation24_spill] sm:$0xff] %v2563_v46 }
  0xdb   :  { %v396_v50 = vpop.f32.mrf.mxu2  ;;  %v340_v63 = vpop.f32.mrf.mxu0 }
  0xdc   :  { %v2566_v56 = vadd.f32 %v396_v50, %v2531_v39  ;;  %v425_v58 = vpop.f32.mrf.mxu3  ;;  %v2571_v11 = vadd.f32 %v340_v63, %v127_v25  ;;  %v369_v16 = vpop.f32.mrf.mxu1 }
  0xdd   :  { %v2569_v0 = vadd.f32 %v425_v58, %v2533_v40  ;;  %v2573_v17 = vadd.f32 %v369_v16, %v128_v28 }
  0xde   :  { %2836 = vst [vmem:[#allocation25_spill] sm:$0xff] %v2566_v56 }
  0xdf   :  { %2837 = vst [vmem:[#allocation26_spill] sm:$0xff] %v2569_v0 }
  0xe0   :  { %2838 = vst [vmem:[#allocation27_spill] sm:$0xff] %v2571_v11 }
  0xe1   :  { %2839 = vst [vmem:[#allocation28_spill] sm:$0xff] %v2573_v17 }
  0xe3   :  { %v398_v18 = vpop.f32.mrf.mxu2  ;;  %v343_v46 = vpop.f32.mrf.mxu0 }
  0xe4   :  { %v2576_v24 = vadd.f32 %v398_v18, %v2531_v39  ;;  %v427_v42 = vpop.f32.mrf.mxu3  ;;  %v2581_v50 = vadd.f32 %v343_v46, %v127_v25  ;;  %v372_v56 = vpop.f32.mrf.mxu1 }
  0xe5   :  { %v2579_v36 = vadd.f32 %v427_v42, %v2533_v40  ;;  %v2583_v30 = vadd.f32 %v372_v56, %v128_v28  ;;  %v329_v42 = vadd.f32 %v328_v19, %v127_v25  ;;  %v416_v19 = vadd.f32 %v2525_v29, %v2533_v40 }
  0xe6   :  { %2840 = vst [vmem:[#allocation29_spill] sm:$0xff] %v2576_v24 }
  0xe7   :  { %2841 = vst [vmem:[#allocation30_spill] sm:$0xff] %v2579_v36 }
  0xe8   :  { %2842 = vst [vmem:[#allocation31_spill] sm:$0xff] %v2581_v50  ;;  %v358_v50 = vadd.f32 %v357_v23, %v128_v28 }
  0xe9   :  { %2843 = vst [vmem:[#allocation32_spill] sm:$0xff] %v2583_v30 }
  0xeb   :  { %v401_v58 = vpop.f32.mrf.mxu2  ;;  %v345_v17 = vpop.f32.mrf.mxu0 }
  0xec   :  { %v2586_v63 = vadd.f32 %v401_v58, %v2531_v39  ;;  %v430_v16 = vpop.f32.mrf.mxu3  ;;  %v2591_v18 = vadd.f32 %v345_v17, %v127_v25  ;;  %v374_v24 = vpop.f32.mrf.mxu1 }
  0xed   :  { %v2589_v11 = vadd.f32 %v430_v16, %v2533_v40  ;;  %v2593_v0 = vadd.f32 %v374_v24, %v128_v28 }
  0xee   :  { %2844 = vst [vmem:[#allocation33_spill] sm:$0xff] %v2586_v63 }
  0xef   :  { %2845 = vst [vmem:[#allocation34_spill] sm:$0xff] %v2589_v11 }
  0xf0   :  { %2846 = vst [vmem:[#allocation35_spill] sm:$0xff] %v2591_v18 }
  0xf1   :  { %2847 = vst [vmem:[#allocation36_spill] sm:$0xff] %v2593_v0 }
  0xf3   :  { %v403_v46 = vpop.f32.mrf.mxu2  ;;  %v675_v36 = vpop.f32.mrf.mxu0 }
  0xf4   :  { %v2596_v56 = vadd.f32 %v403_v46, %v2531_v39  ;;  %v432_v30 = vpop.f32.mrf.mxu3  ;;  %v718_v63 = vadd.f32 %v675_v36, %v329_v42  ;;  %v688_v12 = vpop.f32.mrf.mxu1 }
  0xf5   :  { %v2599_v58 = vadd.f32 %v432_v30, %v2533_v40  ;;  %v719_v16 = vadd.f32 %v688_v12, %v358_v50 }
  0xf6   :  { %2848 = vst [vmem:[#allocation37_spill] sm:$0xff] %v2596_v56  ;;  %v1958_v11 = vmul.f32 -1.442695, %v718_v63 }
  0xf7   :  { %2849 = vst [vmem:[#allocation38_spill] sm:$0xff] %v2599_v58  ;;  %v1959_v17 = vmul.f32 -1.442695, %v719_v16 }
  0xf8   :  { %2060 = vpow2.f32 %v1958_v11  ;;  %v387_v11 = vadd.f32 %v2523_v27, %v2531_v39 }
  0xf9   :  { %2062 = vpow2.f32 %v1959_v17 }
  0xfb   :  { %v701_v25 = vpop.f32.mrf.mxu2  ;;  %v677_v28 = vpop.f32.mrf.mxu0 }
  0xfc   :  { %v714_v23 = vpop.f32.mrf.mxu3  ;;  %v690_v46 = vpop.f32.mrf.mxu1  ;;  %v720_v40 = vadd.f32 %v701_v25, %v387_v11 }
  0xfd   :  { %v721_v24 = vadd.f32 %v714_v23, %v416_v19 }
  0xfe   :  { %v2061_v56 = vpop.eup %2060 }
  0xff   :  { %v1960_v0 = vmul.f32 -1.442695, %v721_v24  ;;  %v2063_v18 = vpop.eup %2062  ;;  %v725_v30 = vadd.f32 1.0, %v2061_v56 }
 0x100   :  { %v744_v58 = vadd.f32 1.0, %v2063_v18 }
 0x101   :  { %2064 = vpow2.f32 %v1960_v0  ;;  %v737_v56 = vand.u32 2147483648, %v725_v30  ;;  %v735_v28 = vand.u32 2147483647, %v725_v30  ;;  %vm731_vm2 = vweird.f32 %v725_v30 }
 0x102   :  { %2066 = vrcp.f32 %v725_v30  ;;  %v756_v0 = vand.u32 2147483648, %v744_v58  ;;  %v754_v46 = vand.u32 2147483647, %v744_v58  ;;  %vm750_vm3 = vweird.f32 %v744_v58 }
 0x103   :  { %2068 = vrcp.f32 %v744_v58  ;;  %v703_v12 = vpop.f32.mrf.mxu2  ;;  %v738_v25 = vor.u32 1.1754944e-38, %v737_v56  ;;  %vm736_vm5 = vcmp.eq.f32.partialorder %v735_v28, 8.507059e+37 }
 0x104   :  { %v716_v36 = vpop.f32.mrf.mxu3  ;;  %vm755_vm7 = vcmp.eq.f32.partialorder %v754_v46, 8.507059e+37 }
 0x105   :  { %v757_v36 = vor.u32 1.1754944e-38, %v756_v0 }
 0x107   :  { %v2065_v50 = vpop.eup %2064 }
 0x108   :  { %v2067_v29 = vpop.eup %2066  ;;  %v764_v63 = vadd.f32 1.0, %v2065_v50 }
 0x109   :  { %v2069_v42 = vpop.eup %2068  ;;  %v727_v16 = vmul.f32 %v2067_v29, %v725_v30  ;;  %vm732_vm0 = vweird.f32 %v2067_v29 }
 0x10a   :  { %v746_v17 = vmul.f32 %v2069_v42, %v744_v58  ;;  %2070 = vrcp.f32 %v764_v63  ;;  %vm751_vm1 = vweird.f32 %v2069_v42  ;;  %vm733_vm4 = vmor %vm731_vm2, %vm732_vm0  ;;  %v776_v56 = vand.u32 2147483648, %v764_v63 }
 0x10b   :  { %v728_v19 = vsub.f32 1.0, %v727_v16  ;;  %2072 = vtanh.f32 %v720_v40  ;;  %vm752_vm6 = vmor %vm750_vm3, %vm751_vm1  ;;  %vm770_vm9 = vweird.f32 %v764_v63 }
 0x10c   :  { %v747_v23 = vsub.f32 1.0, %v746_v17  ;;  %v777_v28 = vor.u32 1.1754944e-38, %v776_v56 }
 0x10d   :  { %v729_v18 = vmul.f32 %v2067_v29, %v728_v19 }
 0x10e   :  { %v748_v24 = vmul.f32 %v2069_v42, %v747_v23 }
 0x10f   :  { %v730_v27 = vadd.f32 %v2067_v29, %v729_v18 }
 0x110   :  { %v2071_v39 = vpop.eup %2070  ;;  %v749_v12 = vadd.f32 %v2069_v42, %v748_v24 }
 0x111   :  { %v734_v11 = vsel %vm733_vm4, %v2067_v29, %v730_v27  ;;  %v766_v50 = vmul.f32 %v2071_v39, %v764_v63  ;;  %v2073_v40 = vpop.eup %2072  ;;  %vm771_vm8 = vweird.f32 %v2071_v39  ;;  %v774_v29 = vand.u32 2147483647, %v764_v63 }
 0x112   :  { %v739_v16 = vsel %vm736_vm5, %v738_v25, %v734_v11  ;;  %v753_v17 = vsel %vm752_vm6, %v2069_v42, %v749_v12  ;;  %vm772_vm10 = vmor %vm770_vm9, %vm771_vm8 }
 0x113   :  { %v758_v19 = vsel %vm755_vm7, %v757_v36, %v753_v17  ;;  %v781_v23 = vmul.f32 %v2073_v40, %v739_v16  ;;  %v767_v6 = vsub.f32 1.0, %v766_v50  ;;  %vm775_vm11 = vcmp.eq.f32.partialorder %v774_v29, 8.507059e+37 }
 0x114   :  { %v780_v62 = vmul.f32 0.0, %v758_v19 }
 0x115   :  { %v768_v18 = vmul.f32 %v2071_v39, %v767_v6 }
 0x116   :  { %v2605_v30 = vadd.f32 %v781_v23, %v780_v62 }
 0x117   :  { %v769_v58 = vadd.f32 %v2071_v39, %v768_v18 }
 0x118   :  { %2074 = vtanh.f32 %v2605_v30 }
 0x119   :  { %v773_v0 = vsel %vm772_vm10, %v2071_v39, %v769_v58 }
 0x11a   :  { %v778_v24 = vsel %vm775_vm11, %v777_v28, %v773_v0 }
 0x11e   :  { %v2075_v42 = vpop.eup %2074 }
 0x11f   :  { %v784_v46 = vmul.f32 %v2075_v42, %v778_v24 }
 0x121   :  { %v790_v27 = vpack.c.bf16 %v784_v46, %v784_v46 }
 0x123   :  { %799 = vmatmul.bf16.vlgmr.msra.gmra.mxu0 %v790_v27  ;;  %812 = vmatmul.bf16.vlgmr.msra.gmra.mxu1 %v790_v27 }
 0x124   :  { %825 = vmatmul.bf16.vlgmr.msra.gmra.mxu2 %v790_v27  ;;  %838 = vmatmul.bf16.vlgmr.msra.gmra.mxu3 %v790_v27 }
 0x125   :  { %1041 = vmatpush.bf16.msra.mxu0 %v2363_v37  ;;  %1054 = vmatpush.bf16.msra.mxu1 %v2365_v41 }
 0x126   :  { %1067 = vmatpush.bf16.msra.mxu2 %v2367_v47  ;;  %1080 = vmatpush.bf16.msra.mxu3 %v2370_v48 }
 0x129   :  { %1042 = vmatpush.bf16.msra.mxu0 %v2372_v49  ;;  %1055 = vmatpush.bf16.msra.mxu1 %v2375_v53 }
 0x12a   :  { %1068 = vmatpush.bf16.msra.mxu2 %v2378_v59  ;;  %1081 = vmatpush.bf16.msra.mxu3 %v2382_v60 }
 0x12d   :  { %1043 = vmatpush.bf16.msra.mxu0 %v2384_v61  ;;  %1056 = vmatpush.bf16.msra.mxu1 %v2387_v1 }
 0x12e   :  { %1069 = vmatpush.bf16.msra.mxu2 %v2390_v7  ;;  %1082 = vmatpush.bf16.msra.mxu3 %v2394_v8 }
 0x131   :  { %1044 = vmatpush.bf16.msra.mxu0 %v2396_v9  ;;  %1057 = vmatpush.bf16.msra.mxu1 %v2399_v13 }
 0x132   :  { %1070 = vmatpush.bf16.msra.mxu2 %v2402_v20  ;;  %1083 = vmatpush.bf16.msra.mxu3 %v2406_v21 }
 0x135   :  { %1045 = vmatpush.bf16.msra.mxu0 %v2408_v22  ;;  %1058 = vmatpush.bf16.msra.mxu1 %v2411_v26 }
 0x136   :  { %1071 = vmatpush.bf16.msra.mxu2 %v2414_v32  ;;  %1084 = vmatpush.bf16.msra.mxu3 %v2418_v33 }
 0x139   :  { %1046 = vmatpush.bf16.msra.mxu0 %v2420_v34  ;;  %1059 = vmatpush.bf16.msra.mxu1 %v2423_v35 }
 0x13a   :  { %1072 = vmatpush.bf16.msra.mxu2 %v2435_v52  ;;  %1085 = vmatpush.bf16.msra.mxu3 %v2428_v43 }
 0x13d   :  { %1047 = vmatpush.bf16.msra.mxu0 %v2430_v44  ;;  %1060 = vmatpush.bf16.msra.mxu1 %v2433_v51 }
 0x13e   :  { %1073 = vmatpush.bf16.msra.mxu2 %v2444_v4  ;;  %1086 = vmatpush.bf16.msra.mxu3 %v2440_v2 }
 0x141   :  { %1048 = vmatpush.bf16.msra.mxu0 %v2442_v3  ;;  %1061 = vmatpush.bf16.msra.mxu1 %v2447_v10 }
 0x142   :  { %1074 = vmatpush.bf16.msra.mxu2 %v2450_v14  ;;  %1087 = vmatpush.bf16.msra.mxu3 %v2454_v15 }
 0x1a0   :  { %v800_v62 = vpop.f32.mrf.mxu0  ;;  %v813_v6 = vpop.f32.mrf.mxu1 }
 0x1a1   :  { %v843_v63 = vadd.f32 %v800_v62, %v2527_v31  ;;  %v844_v39 = vadd.f32 %v813_v6, %v2529_v38 }
 0x1a3   :  { %v1961_v25 = vmul.f32 -1.442695, %v843_v63  ;;  %v1962_v12 = vmul.f32 -1.442695, %v844_v39 }
 0x1a5   :  { %2076 = vpow2.f32 %v1961_v25 }
 0x1a6   :  { %2078 = vpow2.f32 %v1962_v12 }
 0x1a7   :  { %v826_v36 = vpop.f32.mrf.mxu2  ;;  %v839_v11 = vpop.f32.mrf.mxu3 }
 0x1a8   :  { %v846_v50 = vadd.f32 %v839_v11, %v2539_v54  ;;  %v802_v40 = vpop.f32.mrf.mxu0  ;;  %v815_v16 = vpop.f32.mrf.mxu1  ;;  %v845_v28 = vadd.f32 %v826_v36, %v2536_v45 }
 0x1aa   :  { %v1963_v17 = vmul.f32 -1.442695, %v846_v50 }
 0x1ab   :  { %v2077_v19 = vpop.eup %2076 }
 0x1ac   :  { %v2079_v23 = vpop.eup %2078  ;;  %v850_v18 = vadd.f32 1.0, %v2077_v19  ;;  %2080 = vpow2.f32 %v1963_v17 }
 0x1ad   :  { %v869_v58 = vadd.f32 1.0, %v2079_v23 }
 0x1ae   :  { %2082 = vrcp.f32 %v850_v18  ;;  %v862_v62 = vand.u32 2147483648, %v850_v18  ;;  %v860_v39 = vand.u32 2147483647, %v850_v18  ;;  %vm856_vm14 = vweird.f32 %v850_v18 }
 0x1af   :  { %2084 = vrcp.f32 %v869_v58  ;;  %v828_v31 = vpop.f32.mrf.mxu2  ;;  %v841_v38 = vpop.f32.mrf.mxu3  ;;  %v881_v6 = vand.u32 2147483648, %v869_v58  ;;  %v879_v12 = vand.u32 2147483647, %v869_v58  ;;  %vm875_vm15 = vweird.f32 %v869_v58 }
 0x1b0   :  { %v863_v45 = vor.u32 1.1754944e-38, %v862_v62  ;;  %vm861_vm2 = vcmp.eq.f32.partialorder %v860_v39, 8.507059e+37 }
 0x1b1   :  { %v882_v16 = vor.u32 1.1754944e-38, %v881_v6  ;;  %vm880_vm3 = vcmp.eq.f32.partialorder %v879_v12, 8.507059e+37 }
 0x1b2   :  { %v2081_v56 = vpop.eup %2080 }
 0x1b3   :  { %v889_v29 = vadd.f32 1.0, %v2081_v56 }
 0x1b4   :  { %v2083_v0 = vpop.eup %2082 }
 0x1b5   :  { %v2085_v42 = vpop.eup %2084  ;;  %v852_v24 = vmul.f32 %v2083_v0, %v850_v18  ;;  %2086 = vrcp.f32 %v889_v29  ;;  %vm857_vm12 = vweird.f32 %v2083_v0  ;;  %vm895_vm5 = vweird.f32 %v889_v29 }
 0x1b6   :  { %v871_v54 = vmul.f32 %v2085_v42, %v869_v58  ;;  %2088 = vtanh.f32 %v845_v28  ;;  %vm876_vm13 = vweird.f32 %v2085_v42  ;;  %vm858_vm0 = vmor %vm856_vm14, %vm857_vm12 }
 0x1b7   :  { %v853_v46 = vsub.f32 1.0, %v852_v24  ;;  %vm877_vm1 = vmor %vm875_vm15, %vm876_vm13 }
 0x1b8   :  { %v872_v27 = vsub.f32 1.0, %v871_v54 }
 0x1b9   :  { %v854_v63 = vmul.f32 %v2083_v0, %v853_v46  ;;  %v901_v46 = vand.u32 2147483648, %v889_v29 }
 0x1ba   :  { %v873_v25 = vmul.f32 %v2085_v42, %v872_v27 }
 0x1bb   :  { %v2087_v11 = vpop.eup %2086  ;;  %v855_v50 = vadd.f32 %v2083_v0, %v854_v63  ;;  %v902_v62 = vor.u32 1.1754944e-38, %v901_v46 }
 0x1bc   :  { %v874_v36 = vadd.f32 %v2085_v42, %v873_v25  ;;  %v891_v40 = vmul.f32 %v2087_v11, %v889_v29  ;;  %v2089_v19 = vpop.eup %2088  ;;  %vm896_vm4 = vweird.f32 %v2087_v11 }
 0x1bd   :  { %v859_v17 = vsel %vm858_vm0, %v2083_v0, %v855_v50  ;;  %v899_v0 = vand.u32 2147483647, %v889_v29  ;;  %vm897_vm6 = vmor %vm895_vm5, %vm896_vm4 }
 0x1be   :  { %v864_v23 = vsel %vm861_vm2, %v863_v45, %v859_v17  ;;  %v878_v31 = vsel %vm877_vm1, %v2085_v42, %v874_v36  ;;  %v892_v38 = vsub.f32 1.0, %v891_v40 }
 0x1bf   :  { %v883_v56 = vsel %vm880_vm3, %v882_v16, %v878_v31  ;;  %v906_v28 = vmul.f32 %v2089_v19, %v864_v23  ;;  %vm900_vm7 = vcmp.eq.f32.partialorder %v899_v0, 8.507059e+37 }
 0x1c0   :  { %v905_v24 = vmul.f32 %v883_v56, %v2605_v30  ;;  %v893_v54 = vmul.f32 %v2087_v11, %v892_v38 }
 0x1c2   :  { %v2645_v18 = vadd.f32 %v906_v28, %v905_v24  ;;  %v894_v58 = vadd.f32 %v2087_v11, %v893_v54 }
 0x1c4   :  { %2090 = vtanh.f32 %v2645_v18  ;;  %v898_v27 = vsel %vm897_vm6, %v2087_v11, %v894_v58  ;;  %v2850_v58 = vld [vmem:[#allocation18_spill] sm:$0xff] }
 0x1c5   :  { %v903_v6 = vsel %vm900_vm7, %v902_v62, %v898_v27 }
 0x1ca   :  { %v2091_v42 = vpop.eup %2090 }
 0x1cb   :  { %v909_v63 = vmul.f32 %v2091_v42, %v903_v6 }
 0x1cd   :  { %v915_v39 = vpack.c.bf16 %v909_v63, %v909_v63 }
 0x1cf   :  { %924 = vmatmul.bf16.vlgmr.msrb.gmra.mxu0 %v915_v39  ;;  %937 = vmatmul.bf16.vlgmr.msrb.gmra.mxu1 %v915_v39 }
 0x1d0   :  { %950 = vmatmul.bf16.vlgmr.msrb.gmra.mxu2 %v915_v39  ;;  %963 = vmatmul.bf16.vlgmr.msrb.gmra.mxu3 %v915_v39 }
 0x1d1   :  { %1166 = vmatpush.bf16.msrb.mxu0 %v2363_v37  ;;  %1179 = vmatpush.bf16.msrb.mxu1 %v2365_v41 }
 0x1d2   :  { %1192 = vmatpush.bf16.msrb.mxu2 %v2367_v47  ;;  %1205 = vmatpush.bf16.msrb.mxu3 %v2370_v48 }
 0x1d5   :  { %1167 = vmatpush.bf16.msrb.mxu0 %v2372_v49  ;;  %1180 = vmatpush.bf16.msrb.mxu1 %v2375_v53 }
 0x1d6   :  { %1193 = vmatpush.bf16.msrb.mxu2 %v2378_v59  ;;  %1206 = vmatpush.bf16.msrb.mxu3 %v2382_v60 }
 0x1d9   :  { %1168 = vmatpush.bf16.msrb.mxu0 %v2384_v61  ;;  %1181 = vmatpush.bf16.msrb.mxu1 %v2387_v1 }
 0x1da   :  { %1194 = vmatpush.bf16.msrb.mxu2 %v2390_v7  ;;  %1207 = vmatpush.bf16.msrb.mxu3 %v2394_v8 }
 0x1dd   :  { %1169 = vmatpush.bf16.msrb.mxu0 %v2396_v9  ;;  %1182 = vmatpush.bf16.msrb.mxu1 %v2399_v13 }
 0x1de   :  { %1195 = vmatpush.bf16.msrb.mxu2 %v2402_v20  ;;  %1208 = vmatpush.bf16.msrb.mxu3 %v2406_v21 }
 0x1e1   :  { %1170 = vmatpush.bf16.msrb.mxu0 %v2408_v22  ;;  %1183 = vmatpush.bf16.msrb.mxu1 %v2411_v26 }
 0x1e2   :  { %1196 = vmatpush.bf16.msrb.mxu2 %v2414_v32  ;;  %1209 = vmatpush.bf16.msrb.mxu3 %v2418_v33 }
 0x1e5   :  { %1171 = vmatpush.bf16.msrb.mxu0 %v2420_v34  ;;  %1184 = vmatpush.bf16.msrb.mxu1 %v2423_v35 }
 0x1e6   :  { %1197 = vmatpush.bf16.msrb.mxu2 %v2435_v52  ;;  %1210 = vmatpush.bf16.msrb.mxu3 %v2428_v43 }
 0x1e9   :  { %1172 = vmatpush.bf16.msrb.mxu0 %v2430_v44  ;;  %1185 = vmatpush.bf16.msrb.mxu1 %v2433_v51 }
 0x1ea   :  { %1198 = vmatpush.bf16.msrb.mxu2 %v2444_v4  ;;  %1211 = vmatpush.bf16.msrb.mxu3 %v2440_v2 }
 0x1ed   :  { %1173 = vmatpush.bf16.msrb.mxu0 %v2442_v3  ;;  %1186 = vmatpush.bf16.msrb.mxu1 %v2447_v10 }
 0x1ee   :  { %1199 = vmatpush.bf16.msrb.mxu2 %v2450_v14  ;;  %1212 = vmatpush.bf16.msrb.mxu3 %v2454_v15 }
 0x24c   :  { %v925_v30 = vpop.f32.mrf.mxu0  ;;  %v938_v29 = vpop.f32.mrf.mxu1 }
 0x24d   :  { %v968_v25 = vadd.f32 %v925_v30, %v2541_v55  ;;  %v969_v12 = vadd.f32 %v938_v29, %v2543_v57 }
 0x24f   :  { %v1964_v11 = vmul.f32 -1.442695, %v968_v25  ;;  %v1965_v50 = vmul.f32 -1.442695, %v969_v12 }
 0x251   :  { %2092 = vpow2.f32 %v1964_v11 }
 0x252   :  { %2094 = vpow2.f32 %v1965_v50 }
 0x253   :  { %v951_v45 = vpop.f32.mrf.mxu2  ;;  %v964_v36 = vpop.f32.mrf.mxu3 }
 0x254   :  { %v971_v40 = vadd.f32 %v964_v36, %v2549_v5  ;;  %v927_v16 = vpop.f32.mrf.mxu0  ;;  %v940_v17 = vpop.f32.mrf.mxu1  ;;  %v970_v46 = vadd.f32 %v951_v45, %v2850_v58 }
 0x256   :  { %v1966_v19 = vmul.f32 -1.442695, %v971_v40 }
 0x257   :  { %v2093_v23 = vpop.eup %2092 }
 0x258   :  { %v2095_v31 = vpop.eup %2094  ;;  %v975_v38 = vadd.f32 1.0, %v2093_v23  ;;  %2096 = vpow2.f32 %v1966_v19 }
 0x259   :  { %v994_v56 = vadd.f32 1.0, %v2095_v31 }
 0x25a   :  { %2098 = vrcp.f32 %v975_v38  ;;  %v987_v6 = vand.u32 2147483648, %v975_v38  ;;  %v985_v30 = vand.u32 2147483647, %v975_v38  ;;  %vm981_vm10 = vweird.f32 %v975_v38 }
 0x25b   :  { %2100 = vrcp.f32 %v994_v56  ;;  %v953_v55 = vpop.f32.mrf.mxu2  ;;  %v966_v57 = vpop.f32.mrf.mxu3  ;;  %v1006_v63 = vand.u32 2147483648, %v994_v56  ;;  %v1004_v25 = vand.u32 2147483647, %v994_v56  ;;  %vm1000_vm11 = vweird.f32 %v994_v56 }
 0x25c   :  { %v988_v50 = vor.u32 1.1754944e-38, %v987_v6  ;;  %vm986_vm14 = vcmp.eq.f32.partialorder %v985_v30, 8.507059e+37  ;;  %v2852_v30 = vld [vmem:[#allocation20_spill] sm:$0xff] }
 0x25d   :  { %v1007_v40 = vor.u32 1.1754944e-38, %v1006_v63  ;;  %vm1005_vm15 = vcmp.eq.f32.partialorder %v1004_v25, 8.507059e+37  ;;  %v2851_v63 = vld [vmem:[#allocation19_spill] sm:$0xff] }
 0x25e   :  { %v2097_v28 = vpop.eup %2096 }
 0x25f   :  { %v1014_v24 = vadd.f32 1.0, %v2097_v28 }
 0x260   :  { %v2099_v54 = vpop.eup %2098 }
 0x261   :  { %v2101_v0 = vpop.eup %2100  ;;  %v977_v27 = vmul.f32 %v2099_v54, %v975_v38  ;;  %2102 = vrcp.f32 %v1014_v24  ;;  %vm982_vm8 = vweird.f32 %v2099_v54  ;;  %vm1020_vm1 = vweird.f32 %v1014_v24 }
 0x262   :  { %v996_v5 = vmul.f32 %v2101_v0, %v994_v56  ;;  %2104 = vtanh.f32 %v970_v46  ;;  %vm1001_vm9 = vweird.f32 %v2101_v0  ;;  %vm983_vm12 = vmor %vm981_vm10, %vm982_vm8  ;;  %v1026_v46 = vand.u32 2147483648, %v1014_v24 }
 0x263   :  { %v978_v62 = vsub.f32 1.0, %v977_v27  ;;  %vm1002_vm13 = vmor %vm1000_vm11, %vm1001_vm9 }
 0x264   :  { %v997_v42 = vsub.f32 1.0, %v996_v5  ;;  %v1027_v5 = vor.u32 1.1754944e-38, %v1026_v46 }
 0x265   :  { %v979_v39 = vmul.f32 %v2099_v54, %v978_v62 }
 0x266   :  { %v998_v29 = vmul.f32 %v2101_v0, %v997_v42 }
 0x267   :  { %v2103_v12 = vpop.eup %2102  ;;  %v980_v11 = vadd.f32 %v2099_v54, %v979_v39 }
 0x268   :  { %v999_v45 = vadd.f32 %v2101_v0, %v998_v29  ;;  %v1016_v36 = vmul.f32 %v2103_v12, %v1014_v24  ;;  %v2105_v17 = vpop.eup %2104  ;;  %vm1021_vm0 = vweird.f32 %v2103_v12 }
 0x269   :  { %v984_v16 = vsel %vm983_vm12, %v2099_v54, %v980_v11  ;;  %v1024_v54 = vand.u32 2147483647, %v1014_v24  ;;  %vm1022_vm2 = vmor %vm1020_vm1, %vm1021_vm0 }
 0x26a   :  { %v989_v19 = vsel %vm986_vm14, %v988_v50, %v984_v16  ;;  %v1003_v23 = vsel %vm1002_vm13, %v2101_v0, %v999_v45  ;;  %v1017_v31 = vsub.f32 1.0, %v1016_v36  ;;  %v2853_v45 = vld [vmem:[#allocation22_spill] sm:$0xff] }
 0x26b   :  { %v1008_v55 = vsel %vm1005_vm15, %v1007_v40, %v1003_v23  ;;  %v1031_v57 = vmul.f32 %v2105_v17, %v989_v19  ;;  %vm1025_vm3 = vcmp.eq.f32.partialorder %v1024_v54, 8.507059e+37  ;;  %v2854_v54 = vld [vmem:[#allocation21_spill] sm:$0xff] }
 0x26c   :  { %v1030_v28 = vmul.f32 %v1008_v55, %v2645_v18  ;;  %v1018_v58 = vmul.f32 %v2103_v12, %v1017_v31 }
 0x26e   :  { %v2685_v38 = vadd.f32 %v1031_v57, %v1030_v28  ;;  %v1019_v56 = vadd.f32 %v2103_v12, %v1018_v58 }
 0x270   :  { %2106 = vtanh.f32 %v2685_v38  ;;  %v1023_v27 = vsel %vm1022_vm2, %v2103_v12, %v1019_v56 }
 0x271   :  { %v1028_v62 = vsel %vm1025_vm3, %v1027_v5, %v1023_v27 }
 0x276   :  { %v2107_v0 = vpop.eup %2106 }
 0x277   :  { %v1034_v42 = vmul.f32 %v2107_v0, %v1028_v62 }
 0x279   :  { %v1040_v6 = vpack.c.bf16 %v1034_v42, %v1034_v42 }
 0x27b   :  { %1049 = vmatmul.bf16.vlgmr.msra.gmra.mxu0 %v1040_v6  ;;  %1062 = vmatmul.bf16.vlgmr.msra.gmra.mxu1 %v1040_v6 }
 0x27c   :  { %1075 = vmatmul.bf16.vlgmr.msra.gmra.mxu2 %v1040_v6  ;;  %1088 = vmatmul.bf16.vlgmr.msra.gmra.mxu3 %v1040_v6 }
 0x27d   :  { %1291 = vmatpush.bf16.msra.mxu0 %v2363_v37  ;;  %1304 = vmatpush.bf16.msra.mxu1 %v2365_v41 }
 0x27e   :  { %1317 = vmatpush.bf16.msra.mxu2 %v2367_v47  ;;  %1330 = vmatpush.bf16.msra.mxu3 %v2370_v48 }
 0x281   :  { %1292 = vmatpush.bf16.msra.mxu0 %v2372_v49  ;;  %1305 = vmatpush.bf16.msra.mxu1 %v2375_v53 }
 0x282   :  { %1318 = vmatpush.bf16.msra.mxu2 %v2378_v59  ;;  %1331 = vmatpush.bf16.msra.mxu3 %v2382_v60 }
 0x285   :  { %1293 = vmatpush.bf16.msra.mxu0 %v2384_v61  ;;  %1306 = vmatpush.bf16.msra.mxu1 %v2387_v1 }
 0x286   :  { %1319 = vmatpush.bf16.msra.mxu2 %v2390_v7  ;;  %1332 = vmatpush.bf16.msra.mxu3 %v2394_v8 }
 0x289   :  { %1294 = vmatpush.bf16.msra.mxu0 %v2396_v9  ;;  %1307 = vmatpush.bf16.msra.mxu1 %v2399_v13 }
 0x28a   :  { %1320 = vmatpush.bf16.msra.mxu2 %v2402_v20  ;;  %1333 = vmatpush.bf16.msra.mxu3 %v2406_v21 }
 0x28d   :  { %1295 = vmatpush.bf16.msra.mxu0 %v2408_v22  ;;  %1308 = vmatpush.bf16.msra.mxu1 %v2411_v26 }
 0x28e   :  { %1321 = vmatpush.bf16.msra.mxu2 %v2414_v32  ;;  %1334 = vmatpush.bf16.msra.mxu3 %v2418_v33 }
 0x291   :  { %1296 = vmatpush.bf16.msra.mxu0 %v2420_v34  ;;  %1309 = vmatpush.bf16.msra.mxu1 %v2423_v35 }
 0x292   :  { %1322 = vmatpush.bf16.msra.mxu2 %v2435_v52  ;;  %1335 = vmatpush.bf16.msra.mxu3 %v2428_v43 }
 0x295   :  { %1297 = vmatpush.bf16.msra.mxu0 %v2430_v44  ;;  %1310 = vmatpush.bf16.msra.mxu1 %v2433_v51 }
 0x296   :  { %1323 = vmatpush.bf16.msra.mxu2 %v2444_v4  ;;  %1336 = vmatpush.bf16.msra.mxu3 %v2440_v2 }
 0x299   :  { %1298 = vmatpush.bf16.msra.mxu0 %v2442_v3  ;;  %1311 = vmatpush.bf16.msra.mxu1 %v2447_v10 }
 0x29a   :  { %1324 = vmatpush.bf16.msra.mxu2 %v2450_v14  ;;  %1337 = vmatpush.bf16.msra.mxu3 %v2454_v15 }
 0x2f8   :  { %v1050_v18 = vpop.f32.mrf.mxu0  ;;  %v1063_v24 = vpop.f32.mrf.mxu1 }
 0x2f9   :  { %v1093_v39 = vadd.f32 %v1050_v18, %v2851_v63  ;;  %v1094_v29 = vadd.f32 %v1063_v24, %v2852_v30 }
 0x2fb   :  { %v1967_v25 = vmul.f32 -1.442695, %v1093_v39  ;;  %v1968_v12 = vmul.f32 -1.442695, %v1094_v29 }
 0x2fd   :  { %2108 = vpow2.f32 %v1967_v25 }
 0x2fe   :  { %2110 = vpow2.f32 %v1968_v12 }
 0x2ff   :  { %v1076_v11 = vpop.f32.mrf.mxu2  ;;  %v1089_v50 = vpop.f32.mrf.mxu3 }
 0x300   :  { %v1096_v36 = vadd.f32 %v1089_v50, %v2853_v45  ;;  %v1052_v40 = vpop.f32.mrf.mxu0  ;;  %v1065_v16 = vpop.f32.mrf.mxu1  ;;  %v1095_v27 = vadd.f32 %v1076_v11, %v2854_v54 }
 0x302   :  { %v1969_v17 = vmul.f32 -1.442695, %v1096_v36 }
 0x303   :  { %v2109_v19 = vpop.eup %2108 }
 0x304   :  { %v2111_v23 = vpop.eup %2110  ;;  %v1100_v31 = vadd.f32 1.0, %v2109_v19  ;;  %2112 = vpow2.f32 %v1969_v17 }
 0x305   :  { %v1119_v55 = vadd.f32 1.0, %v2111_v23 }
 0x306   :  { %2114 = vrcp.f32 %v1100_v31  ;;  %v1112_v18 = vand.u32 2147483648, %v1100_v31  ;;  %v1110_v39 = vand.u32 2147483647, %v1100_v31  ;;  %vm1106_vm6 = vweird.f32 %v1100_v31 }
 0x307   :  { %2116 = vrcp.f32 %v1119_v55  ;;  %v1078_v57 = vpop.f32.mrf.mxu2  ;;  %v1091_v28 = vpop.f32.mrf.mxu3  ;;  %v1131_v24 = vand.u32 2147483648, %v1119_v55  ;;  %v1129_v29 = vand.u32 2147483647, %v1119_v55  ;;  %vm1125_vm7 = vweird.f32 %v1119_v55 }
 0x308   :  { %v1113_v11 = vor.u32 1.1754944e-38, %v1112_v18  ;;  %vm1111_vm10 = vcmp.eq.f32.partialorder %v1110_v39, 8.507059e+37  ;;  %v2856_v39 = vld [vmem:[#allocation24_spill] sm:$0xff] }
 0x309   :  { %v1132_v36 = vor.u32 1.1754944e-38, %v1131_v24  ;;  %vm1130_vm11 = vcmp.eq.f32.partialorder %v1129_v29, 8.507059e+37  ;;  %v2855_v24 = vld [vmem:[#allocation23_spill] sm:$0xff] }
 0x30a   :  { %v2113_v58 = vpop.eup %2112 }
 0x30b   :  { %v1139_v56 = vadd.f32 1.0, %v2113_v58 }
 0x30c   :  { %v2115_v46 = vpop.eup %2114 }
 0x30d   :  { %v2117_v5 = vpop.eup %2116  ;;  %v1102_v0 = vmul.f32 %v2115_v46, %v1100_v31  ;;  %2118 = vrcp.f32 %v1139_v56  ;;  %vm1107_vm4 = vweird.f32 %v2115_v46  ;;  %vm1145_vm13 = vweird.f32 %v1139_v56 }
 0x30e   :  { %v1121_v62 = vmul.f32 %v2117_v5, %v1119_v55  ;;  %2120 = vtanh.f32 %v1095_v27  ;;  %vm1126_vm5 = vweird.f32 %v2117_v5  ;;  %vm1108_vm8 = vmor %vm1106_vm6, %vm1107_vm4  ;;  %v1151_v27 = vand.u32 2147483648, %v1139_v56 }
 0x30f   :  { %v1103_v42 = vsub.f32 1.0, %v1102_v0  ;;  %vm1127_vm9 = vmor %vm1125_vm7, %vm1126_vm5 }
 0x310   :  { %v1122_v6 = vsub.f32 1.0, %v1121_v62  ;;  %v1152_v62 = vor.u32 1.1754944e-38, %v1151_v27 }
 0x311   :  { %v1104_v63 = vmul.f32 %v2115_v46, %v1103_v42 }
 0x312   :  { %v1123_v30 = vmul.f32 %v2117_v5, %v1122_v6 }
 0x313   :  { %v2119_v25 = vpop.eup %2118  ;;  %v1105_v12 = vadd.f32 %v2115_v46, %v1104_v63 }
 0x314   :  { %v1124_v50 = vadd.f32 %v2117_v5, %v1123_v30  ;;  %v1141_v45 = vmul.f32 %v2119_v25, %v1139_v56  ;;  %v2121_v16 = vpop.eup %2120  ;;  %vm1146_vm12 = vweird.f32 %v2119_v25 }
 0x315   :  { %v1109_v40 = vsel %vm1108_vm8, %v2115_v46, %v1105_v12  ;;  %v1149_v46 = vand.u32 2147483647, %v1139_v56  ;;  %vm1147_vm14 = vmor %vm1145_vm13, %vm1146_vm12 }
 0x316   :  { %v1114_v17 = vsel %vm1111_vm10, %v1113_v11, %v1109_v40  ;;  %v1128_v19 = vsel %vm1127_vm9, %v2117_v5, %v1124_v50  ;;  %v1142_v23 = vsub.f32 1.0, %v1141_v45  ;;  %v2857_v50 = vld [vmem:[#allocation26_spill] sm:$0xff] }
 0x317   :  { %v1133_v57 = vsel %vm1130_vm11, %v1132_v36, %v1128_v19  ;;  %v1156_v28 = vmul.f32 %v2121_v16, %v1114_v17  ;;  %vm1150_vm15 = vcmp.eq.f32.partialorder %v1149_v46, 8.507059e+37  ;;  %v2858_v46 = vld [vmem:[#allocation25_spill] sm:$0xff] }
 0x318   :  { %v1155_v58 = vmul.f32 %v1133_v57, %v2685_v38  ;;  %v1143_v54 = vmul.f32 %v2119_v25, %v1142_v23 }
 0x31a   :  { %v2725_v31 = vadd.f32 %v1156_v28, %v1155_v58  ;;  %v1144_v55 = vadd.f32 %v2119_v25, %v1143_v54 }
 0x31c   :  { %2122 = vtanh.f32 %v2725_v31  ;;  %v1148_v0 = vsel %vm1147_vm14, %v2119_v25, %v1144_v55 }
 0x31d   :  { %v1153_v42 = vsel %vm1150_vm15, %v1152_v62, %v1148_v0 }
 0x322   :  { %v2123_v5 = vpop.eup %2122 }
 0x323   :  { %v1159_v6 = vmul.f32 %v2123_v5, %v1153_v42 }
 0x325   :  { %v1165_v18 = vpack.c.bf16 %v1159_v6, %v1159_v6 }
 0x327   :  { %1174 = vmatmul.bf16.vlgmr.msrb.gmra.mxu0 %v1165_v18  ;;  %1187 = vmatmul.bf16.vlgmr.msrb.gmra.mxu1 %v1165_v18 }
 0x328   :  { %1200 = vmatmul.bf16.vlgmr.msrb.gmra.mxu2 %v1165_v18  ;;  %1213 = vmatmul.bf16.vlgmr.msrb.gmra.mxu3 %v1165_v18 }
 0x329   :  { %1416 = vmatpush.bf16.msrb.mxu0 %v2363_v37  ;;  %1429 = vmatpush.bf16.msrb.mxu1 %v2365_v41 }
 0x32a   :  { %1442 = vmatpush.bf16.msrb.mxu2 %v2367_v47  ;;  %1455 = vmatpush.bf16.msrb.mxu3 %v2370_v48 }
 0x32d   :  { %1417 = vmatpush.bf16.msrb.mxu0 %v2372_v49  ;;  %1430 = vmatpush.bf16.msrb.mxu1 %v2375_v53 }
 0x32e   :  { %1443 = vmatpush.bf16.msrb.mxu2 %v2378_v59  ;;  %1456 = vmatpush.bf16.msrb.mxu3 %v2382_v60 }
 0x331   :  { %1418 = vmatpush.bf16.msrb.mxu0 %v2384_v61  ;;  %1431 = vmatpush.bf16.msrb.mxu1 %v2387_v1 }
 0x332   :  { %1444 = vmatpush.bf16.msrb.mxu2 %v2390_v7  ;;  %1457 = vmatpush.bf16.msrb.mxu3 %v2394_v8 }
 0x335   :  { %1419 = vmatpush.bf16.msrb.mxu0 %v2396_v9  ;;  %1432 = vmatpush.bf16.msrb.mxu1 %v2399_v13 }
 0x336   :  { %1445 = vmatpush.bf16.msrb.mxu2 %v2402_v20  ;;  %1458 = vmatpush.bf16.msrb.mxu3 %v2406_v21 }
 0x339   :  { %1420 = vmatpush.bf16.msrb.mxu0 %v2408_v22  ;;  %1433 = vmatpush.bf16.msrb.mxu1 %v2411_v26 }
 0x33a   :  { %1446 = vmatpush.bf16.msrb.mxu2 %v2414_v32  ;;  %1459 = vmatpush.bf16.msrb.mxu3 %v2418_v33 }
 0x33d   :  { %1421 = vmatpush.bf16.msrb.mxu0 %v2420_v34  ;;  %1434 = vmatpush.bf16.msrb.mxu1 %v2423_v35 }
 0x33e   :  { %1447 = vmatpush.bf16.msrb.mxu2 %v2435_v52  ;;  %1460 = vmatpush.bf16.msrb.mxu3 %v2428_v43 }
 0x341   :  { %1422 = vmatpush.bf16.msrb.mxu0 %v2430_v44  ;;  %1435 = vmatpush.bf16.msrb.mxu1 %v2433_v51 }
 0x342   :  { %1448 = vmatpush.bf16.msrb.mxu2 %v2444_v4  ;;  %1461 = vmatpush.bf16.msrb.mxu3 %v2440_v2 }
 0x345   :  { %1423 = vmatpush.bf16.msrb.mxu0 %v2442_v3  ;;  %1436 = vmatpush.bf16.msrb.mxu1 %v2447_v10 }
 0x346   :  { %1449 = vmatpush.bf16.msrb.mxu2 %v2450_v14  ;;  %1462 = vmatpush.bf16.msrb.mxu3 %v2454_v15 }
 0x3a4   :  { %v1175_v38 = vpop.f32.mrf.mxu0  ;;  %v1188_v56 = vpop.f32.mrf.mxu1 }
 0x3a5   :  { %v1218_v63 = vadd.f32 %v1175_v38, %v2855_v24  ;;  %v1219_v30 = vadd.f32 %v1188_v56, %v2856_v39 }
 0x3a7   :  { %v1970_v29 = vmul.f32 -1.442695, %v1218_v63  ;;  %v1971_v25 = vmul.f32 -1.442695, %v1219_v30 }
 0x3a9   :  { %2124 = vpow2.f32 %v1970_v29 }
 0x3aa   :  { %2126 = vpow2.f32 %v1971_v25 }
 0x3ab   :  { %v1201_v12 = vpop.f32.mrf.mxu2  ;;  %v1214_v11 = vpop.f32.mrf.mxu3 }
 0x3ac   :  { %v1221_v45 = vadd.f32 %v1214_v11, %v2857_v50  ;;  %v1177_v36 = vpop.f32.mrf.mxu0  ;;  %v1190_v40 = vpop.f32.mrf.mxu1  ;;  %v1220_v0 = vadd.f32 %v1201_v12, %v2858_v46 }
 0x3ae   :  { %v1972_v16 = vmul.f32 -1.442695, %v1221_v45 }
 0x3af   :  { %v2125_v17 = vpop.eup %2124 }
 0x3b0   :  { %v2127_v19 = vpop.eup %2126  ;;  %v1225_v23 = vadd.f32 1.0, %v2125_v17  ;;  %2128 = vpow2.f32 %v1972_v16 }
 0x3b1   :  { %v1244_v57 = vadd.f32 1.0, %v2127_v19 }
 0x3b2   :  { %2130 = vrcp.f32 %v1225_v23  ;;  %v1237_v38 = vand.u32 2147483648, %v1225_v23  ;;  %v1235_v63 = vand.u32 2147483647, %v1225_v23  ;;  %vm1231_vm2 = vweird.f32 %v1225_v23 }
 0x3b3   :  { %2132 = vrcp.f32 %v1244_v57  ;;  %v1203_v28 = vpop.f32.mrf.mxu2  ;;  %v1216_v58 = vpop.f32.mrf.mxu3  ;;  %v1256_v56 = vand.u32 2147483648, %v1244_v57  ;;  %v1254_v30 = vand.u32 2147483647, %v1244_v57  ;;  %vm1250_vm3 = vweird.f32 %v1244_v57 }
 0x3b4   :  { %v1238_v12 = vor.u32 1.1754944e-38, %v1237_v38  ;;  %vm1236_vm6 = vcmp.eq.f32.partialorder %v1235_v63, 8.507059e+37 }
 0x3b5   :  { %v1257_v45 = vor.u32 1.1754944e-38, %v1256_v56  ;;  %vm1255_vm7 = vcmp.eq.f32.partialorder %v1254_v30, 8.507059e+37 }
 0x3b6   :  { %v2129_v54 = vpop.eup %2128 }
 0x3b7   :  { %v1264_v55 = vadd.f32 1.0, %v2129_v54 }
 0x3b8   :  { %v2131_v27 = vpop.eup %2130 }
 0x3b9   :  { %v2133_v62 = vpop.eup %2132  ;;  %v1227_v5 = vmul.f32 %v2131_v27, %v1225_v23  ;;  %2134 = vrcp.f32 %v1264_v55  ;;  %vm1232_vm0 = vweird.f32 %v2131_v27  ;;  %vm1270_vm9 = vweird.f32 %v1264_v55 }
 0x3ba   :  { %v1246_v42 = vmul.f32 %v2133_v62, %v1244_v57  ;;  %2136 = vtanh.f32 %v1220_v0  ;;  %vm1251_vm1 = vweird.f32 %v2133_v62  ;;  %vm1233_vm4 = vmor %vm1231_vm2, %vm1232_vm0  ;;  %v1276_v0 = vand.u32 2147483648, %v1264_v55 }
 0x3bb   :  { %v1228_v6 = vsub.f32 1.0, %v1227_v5  ;;  %vm1252_vm5 = vmor %vm1250_vm3, %vm1251_vm1 }
 0x3bc   :  { %v1247_v18 = vsub.f32 1.0, %v1246_v42  ;;  %v1277_v42 = vor.u32 1.1754944e-38, %v1276_v0 }
 0x3bd   :  { %v1229_v24 = vmul.f32 %v2131_v27, %v1228_v6 }
 0x3be   :  { %v1248_v39 = vmul.f32 %v2133_v62, %v1247_v18 }
 0x3bf   :  { %v2135_v29 = vpop.eup %2134  ;;  %v1230_v25 = vadd.f32 %v2131_v27, %v1229_v24 }
 0x3c0   :  { %v1249_v11 = vadd.f32 %v2133_v62, %v1248_v39  ;;  %v1266_v50 = vmul.f32 %v2135_v29, %v1264_v55  ;;  %v2137_v40 = vpop.eup %2136  ;;  %vm1271_vm8 = vweird.f32 %v2135_v29 }
 0x3c1   :  { %v1234_v36 = vsel %vm1233_vm4, %v2131_v27, %v1230_v25  ;;  %v1274_v27 = vand.u32 2147483647, %v1264_v55  ;;  %vm1272_vm10 = vmor %vm1270_vm9, %vm1271_vm8 }
 0x3c2   :  { %v1239_v16 = vsel %vm1236_vm6, %v1238_v12, %v1234_v36  ;;  %v1253_v17 = vsel %vm1252_vm5, %v2133_v62, %v1249_v11  ;;  %v1267_v19 = vsub.f32 1.0, %v1266_v50 }
 0x3c3   :  { %v1258_v28 = vsel %vm1255_vm7, %v1257_v45, %v1253_v17  ;;  %v1281_v58 = vmul.f32 %v2137_v40, %v1239_v16  ;;  %vm1275_vm11 = vcmp.eq.f32.partialorder %v1274_v27, 8.507059e+37 }
 0x3c4   :  { %v1280_v54 = vmul.f32 %v1258_v28, %v2725_v31  ;;  %v1268_v46 = vmul.f32 %v2135_v29, %v1267_v19 }
 0x3c6   :  { %v2765_v23 = vadd.f32 %v1281_v58, %v1280_v54  ;;  %v1269_v57 = vadd.f32 %v2135_v29, %v1268_v46 }
 0x3c8   :  { %2138 = vtanh.f32 %v2765_v23  ;;  %v1273_v5 = vsel %vm1272_vm10, %v2135_v29, %v1269_v57 }
 0x3c9   :  { %v1278_v6 = vsel %vm1275_vm11, %v1277_v42, %v1273_v5 }
 0x3ce   :  { %v2139_v62 = vpop.eup %2138 }
 0x3cf   :  { %v1284_v18 = vmul.f32 %v2139_v62, %v1278_v6 }
 0x3d1   :  { %v1290_v38 = vpack.c.bf16 %v1284_v18, %v1284_v18 }
 0x3d3   :  { %1299 = vmatmul.bf16.vlgmr.msra.gmra.mxu0 %v1290_v38  ;;  %1312 = vmatmul.bf16.vlgmr.msra.gmra.mxu1 %v1290_v38 }
 0x3d4   :  { %1325 = vmatmul.bf16.vlgmr.msra.gmra.mxu2 %v1290_v38  ;;  %1338 = vmatmul.bf16.vlgmr.msra.gmra.mxu3 %v1290_v38 }
 0x3d5   :  { %1541 = vmatpush.bf16.msra.mxu0 %v2363_v37  ;;  %1554 = vmatpush.bf16.msra.mxu1 %v2365_v41 }
 0x3d6   :  { %1567 = vmatpush.bf16.msra.mxu2 %v2367_v47  ;;  %1580 = vmatpush.bf16.msra.mxu3 %v2370_v48  ;;  %v2859_v47 = vld [vmem:[#allocation27_spill] sm:$0xff] }
 0x3d9   :  { %1542 = vmatpush.bf16.msra.mxu0 %v2372_v49  ;;  %1555 = vmatpush.bf16.msra.mxu1 %v2375_v53  ;;  %v2860_v49 = vld [vmem:[#allocation28_spill] sm:$0xff] }
 0x3da   :  { %1568 = vmatpush.bf16.msra.mxu2 %v2378_v59  ;;  %1581 = vmatpush.bf16.msra.mxu3 %v2382_v60 }
 0x3dd   :  { %1543 = vmatpush.bf16.msra.mxu0 %v2384_v61  ;;  %1556 = vmatpush.bf16.msra.mxu1 %v2387_v1 }
 0x3de   :  { %1569 = vmatpush.bf16.msra.mxu2 %v2390_v7  ;;  %1582 = vmatpush.bf16.msra.mxu3 %v2394_v8  ;;  %v2861_v7 = vld [vmem:[#allocation30_spill] sm:$0xff] }
 0x3e1   :  { %1544 = vmatpush.bf16.msra.mxu0 %v2396_v9  ;;  %1557 = vmatpush.bf16.msra.mxu1 %v2399_v13 }
 0x3e2   :  { %1570 = vmatpush.bf16.msra.mxu2 %v2402_v20  ;;  %1583 = vmatpush.bf16.msra.mxu3 %v2406_v21 }
 0x3e5   :  { %1545 = vmatpush.bf16.msra.mxu0 %v2408_v22  ;;  %1558 = vmatpush.bf16.msra.mxu1 %v2411_v26 }
 0x3e6   :  { %1571 = vmatpush.bf16.msra.mxu2 %v2414_v32  ;;  %1584 = vmatpush.bf16.msra.mxu3 %v2418_v33 }
 0x3e9   :  { %1546 = vmatpush.bf16.msra.mxu0 %v2420_v34  ;;  %1559 = vmatpush.bf16.msra.mxu1 %v2423_v35 }
 0x3ea   :  { %1572 = vmatpush.bf16.msra.mxu2 %v2435_v52  ;;  %1585 = vmatpush.bf16.msra.mxu3 %v2428_v43 }
 0x3ed   :  { %1547 = vmatpush.bf16.msra.mxu0 %v2430_v44  ;;  %1560 = vmatpush.bf16.msra.mxu1 %v2433_v51  ;;  %v2862_v51 = vld [vmem:[#allocation29_spill] sm:$0xff] }
 0x3ee   :  { %1573 = vmatpush.bf16.msra.mxu2 %v2444_v4  ;;  %1586 = vmatpush.bf16.msra.mxu3 %v2440_v2 }
 0x3f1   :  { %1548 = vmatpush.bf16.msra.mxu0 %v2442_v3  ;;  %1561 = vmatpush.bf16.msra.mxu1 %v2447_v10 }
 0x3f2   :  { %1574 = vmatpush.bf16.msra.mxu2 %v2450_v14  ;;  %1587 = vmatpush.bf16.msra.mxu3 %v2454_v15 }
 0x450   :  { %v1300_v37 = vpop.f32.mrf.mxu0  ;;  %v1313_v41 = vpop.f32.mrf.mxu1 }
 0x451   :  { %v1343_v48 = vadd.f32 %v1300_v37, %v2859_v47  ;;  %v1344_v53 = vadd.f32 %v1313_v41, %v2860_v49  ;;  %v2863_v37 = vld [vmem:[#allocation31_spill] sm:$0xff]  ;;  %v2864_v47 = vld [vmem:[#allocation32_spill] sm:$0xff] }
 0x453   :  { %v1973_v59 = vmul.f32 -1.442695, %v1343_v48  ;;  %v1974_v60 = vmul.f32 -1.442695, %v1344_v53 }
 0x455   :  { %2140 = vpow2.f32 %v1973_v59 }
 0x456   :  { %2142 = vpow2.f32 %v1974_v60 }
 0x457   :  { %v1326_v61 = vpop.f32.mrf.mxu2  ;;  %v1339_v1 = vpop.f32.mrf.mxu3 }
 0x458   :  { %v1346_v8 = vadd.f32 %v1339_v1, %v2861_v7  ;;  %v1302_v9 = vpop.f32.mrf.mxu0  ;;  %v1315_v13 = vpop.f32.mrf.mxu1  ;;  %v1345_v52 = vadd.f32 %v1326_v61, %v2862_v51  ;;  %v2865_v61 = vld [vmem:[#allocation34_spill] sm:$0xff] }
 0x45a   :  { %v1975_v20 = vmul.f32 -1.442695, %v1346_v8 }
 0x45b   :  { %v2141_v21 = vpop.eup %2140 }
 0x45c   :  { %v2143_v22 = vpop.eup %2142  ;;  %v1350_v26 = vadd.f32 1.0, %v2141_v21  ;;  %2144 = vpow2.f32 %v1975_v20 }
 0x45d   :  { %v1369_v32 = vadd.f32 1.0, %v2143_v22 }
 0x45e   :  { %2146 = vrcp.f32 %v1350_v26  ;;  %v1362_v15 = vand.u32 2147483648, %v1350_v26  ;;  %v1360_v56 = vand.u32 2147483647, %v1350_v26  ;;  %vm1356_vm14 = vweird.f32 %v1350_v26 }
 0x45f   :  { %2148 = vrcp.f32 %v1369_v32  ;;  %v1328_v33 = vpop.f32.mrf.mxu2  ;;  %v1341_v34 = vpop.f32.mrf.mxu3  ;;  %v1381_v31 = vand.u32 2147483648, %v1369_v32  ;;  %v1379_v63 = vand.u32 2147483647, %v1369_v32  ;;  %vm1375_vm15 = vweird.f32 %v1369_v32 }
 0x460   :  { %v1363_v29 = vor.u32 1.1754944e-38, %v1362_v15  ;;  %vm1361_vm2 = vcmp.eq.f32.partialorder %v1360_v56, 8.507059e+37 }
 0x461   :  { %v1382_v11 = vor.u32 1.1754944e-38, %v1381_v31  ;;  %vm1380_vm3 = vcmp.eq.f32.partialorder %v1379_v63, 8.507059e+37 }
 0x462   :  { %v2145_v35 = vpop.eup %2144 }
 0x463   :  { %v1389_v43 = vadd.f32 1.0, %v2145_v35 }
 0x464   :  { %v2147_v44 = vpop.eup %2146 }
 0x465   :  { %v2149_v2 = vpop.eup %2148  ;;  %v1352_v3 = vmul.f32 %v2147_v44, %v1350_v26  ;;  %2150 = vrcp.f32 %v1389_v43  ;;  %vm1357_vm12 = vweird.f32 %v2147_v44  ;;  %v1401_v57 = vand.u32 2147483648, %v1389_v43 }
 0x466   :  { %v1371_v4 = vmul.f32 %v2149_v2, %v1369_v32  ;;  %2152 = vtanh.f32 %v1345_v52  ;;  %vm1376_vm13 = vweird.f32 %v2149_v2  ;;  %vm1358_vm0 = vmor %vm1356_vm14, %vm1357_vm12  ;;  %vm1395_vm5 = vweird.f32 %v1389_v43 }
 0x467   :  { %v1353_v10 = vsub.f32 1.0, %v1352_v3  ;;  %vm1377_vm1 = vmor %vm1375_vm15, %vm1376_vm13  ;;  %v1399_v0 = vand.u32 2147483647, %v1389_v43  ;;  %v1402_v5 = vor.u32 1.1754944e-38, %v1401_v57 }
 0x468   :  { %v1372_v14 = vsub.f32 1.0, %v1371_v4 }
 0x469   :  { %v1354_v55 = vmul.f32 %v2147_v44, %v1353_v10  ;;  %vm1400_vm7 = vcmp.eq.f32.partialorder %v1399_v0, 8.507059e+37 }
 0x46a   :  { %v1373_v24 = vmul.f32 %v2149_v2, %v1372_v14 }
 0x46b   :  { %v2151_v39 = vpop.eup %2150  ;;  %v1355_v30 = vadd.f32 %v2147_v44, %v1354_v55 }
 0x46c   :  { %v1374_v25 = vadd.f32 %v2149_v2, %v1373_v24  ;;  %v1391_v12 = vmul.f32 %v2151_v39, %v1389_v43  ;;  %v2153_v45 = vpop.eup %2152  ;;  %vm1396_vm4 = vweird.f32 %v2151_v39  ;;  %v2866_v43 = vld [vmem:[#allocation33_spill] sm:$0xff] }
 0x46d   :  { %v1359_v50 = vsel %vm1358_vm0, %v2147_v44, %v1355_v30  ;;  %vm1397_vm6 = vmor %vm1395_vm5, %vm1396_vm4 }
 0x46e   :  { %v1364_v36 = vsel %vm1361_vm2, %v1363_v29, %v1359_v50  ;;  %v1378_v40 = vsel %vm1377_vm1, %v2149_v2, %v1374_v25  ;;  %v1392_v16 = vsub.f32 1.0, %v1391_v12 }
 0x46f   :  { %v1383_v17 = vsel %vm1380_vm3, %v1382_v11, %v1378_v40  ;;  %v1406_v19 = vmul.f32 %v2153_v45, %v1364_v36 }
 0x470   :  { %v1405_v28 = vmul.f32 %v1383_v17, %v2765_v23  ;;  %v1393_v58 = vmul.f32 %v2151_v39, %v1392_v16 }
 0x472   :  { %v2805_v54 = vadd.f32 %v1406_v19, %v1405_v28  ;;  %v1394_v46 = vadd.f32 %v2151_v39, %v1393_v58 }
 0x474   :  { %2154 = vtanh.f32 %v2805_v54  ;;  %v1398_v27 = vsel %vm1397_vm6, %v2151_v39, %v1394_v46 }
 0x475   :  { %v1403_v62 = vsel %vm1400_vm7, %v1402_v5, %v1398_v27 }
 0x47a   :  { %v2155_v42 = vpop.eup %2154 }
 0x47b   :  { %v1409_v6 = vmul.f32 %v2155_v42, %v1403_v62 }
 0x47d   :  { %v1415_v18 = vpack.c.bf16 %v1409_v6, %v1409_v6 }
 0x47f   :  { %1424 = vmatmul.bf16.vlgmr.msrb.gmra.mxu0 %v1415_v18  ;;  %1437 = vmatmul.bf16.vlgmr.msrb.gmra.mxu1 %v1415_v18 }
 0x480   :  { %1450 = vmatmul.bf16.vlgmr.msrb.gmra.mxu2 %v1415_v18  ;;  %1463 = vmatmul.bf16.vlgmr.msrb.gmra.mxu3 %v1415_v18 }
 0x4fc   :  { %v1425_v23 = vpop.f32.mrf.mxu0  ;;  %v1438_v38 = vpop.f32.mrf.mxu1 }
 0x4fd   :  { %v1468_v41 = vadd.f32 %v1425_v23, %v2863_v37  ;;  %v1469_v48 = vadd.f32 %v1438_v38, %v2864_v47  ;;  %v2867_v23 = vld [vmem:[#allocation35_spill] sm:$0xff]  ;;  %v2868_v37 = vld [vmem:[#allocation36_spill] sm:$0xff] }
 0x4ff   :  { %v1976_v49 = vmul.f32 -1.442695, %v1468_v41  ;;  %v1977_v53 = vmul.f32 -1.442695, %v1469_v48 }
 0x501   :  { %2156 = vpow2.f32 %v1976_v49 }
 0x502   :  { %2158 = vpow2.f32 %v1977_v53 }
 0x503   :  { %v1451_v59 = vpop.f32.mrf.mxu2  ;;  %v1464_v60 = vpop.f32.mrf.mxu3 }
 0x504   :  { %v1471_v1 = vadd.f32 %v1464_v60, %v2865_v61  ;;  %v1427_v7 = vpop.f32.mrf.mxu0  ;;  %v1440_v8 = vpop.f32.mrf.mxu1  ;;  %v1470_v44 = vadd.f32 %v1451_v59, %v2866_v43  ;;  %v2869_v59 = vld [vmem:[#allocation38_spill] sm:$0xff] }
 0x506   :  { %v1978_v9 = vmul.f32 -1.442695, %v1471_v1 }
 0x507   :  { %v2157_v13 = vpop.eup %2156 }
 0x508   :  { %v2159_v20 = vpop.eup %2158  ;;  %v1475_v21 = vadd.f32 1.0, %v2157_v13  ;;  %2160 = vpow2.f32 %v1978_v9 }
 0x509   :  { %v1494_v22 = vadd.f32 1.0, %v2159_v20 }
 0x50a   :  { %2162 = vrcp.f32 %v1475_v21  ;;  %v1487_v10 = vand.u32 2147483648, %v1475_v21  ;;  %v1485_v31 = vand.u32 2147483647, %v1475_v21  ;;  %vm1481_vm10 = vweird.f32 %v1475_v21 }
 0x50b   :  { %2164 = vrcp.f32 %v1494_v22  ;;  %v1453_v26 = vpop.f32.mrf.mxu2  ;;  %v1466_v32 = vpop.f32.mrf.mxu3  ;;  %v1506_v14 = vand.u32 2147483648, %v1494_v22  ;;  %v1504_v56 = vand.u32 2147483647, %v1494_v22  ;;  %vm1500_vm11 = vweird.f32 %v1494_v22 }
 0x50c   :  { %v1488_v39 = vor.u32 1.1754944e-38, %v1487_v10  ;;  %vm1486_vm14 = vcmp.eq.f32.partialorder %v1485_v31, 8.507059e+37 }
 0x50d   :  { %v1507_v25 = vor.u32 1.1754944e-38, %v1506_v14  ;;  %vm1505_vm15 = vcmp.eq.f32.partialorder %v1504_v56, 8.507059e+37 }
 0x50e   :  { %v2161_v33 = vpop.eup %2160 }
 0x50f   :  { %v1514_v34 = vadd.f32 1.0, %v2161_v33 }
 0x510   :  { %v2163_v35 = vpop.eup %2162 }
 0x511   :  { %v2165_v51 = vpop.eup %2164  ;;  %v1477_v52 = vmul.f32 %v2163_v35, %v1475_v21  ;;  %2166 = vrcp.f32 %v1514_v34  ;;  %vm1482_vm8 = vweird.f32 %v2163_v35  ;;  %v1526_v46 = vand.u32 2147483648, %v1514_v34 }
 0x512   :  { %v1496_v2 = vmul.f32 %v2165_v51, %v1494_v22  ;;  %2168 = vtanh.f32 %v1470_v44  ;;  %vm1501_vm9 = vweird.f32 %v2165_v51  ;;  %vm1483_vm12 = vmor %vm1481_vm10, %vm1482_vm8  ;;  %vm1520_vm1 = vweird.f32 %v1514_v34 }
 0x513   :  { %v1478_v3 = vsub.f32 1.0, %v1477_v52  ;;  %vm1502_vm13 = vmor %vm1500_vm11, %vm1501_vm9  ;;  %v1524_v57 = vand.u32 2147483647, %v1514_v34  ;;  %v1527_v27 = vor.u32 1.1754944e-38, %v1526_v46 }
 0x514   :  { %v1497_v4 = vsub.f32 1.0, %v1496_v2 }
 0x515   :  { %v1479_v15 = vmul.f32 %v2163_v35, %v1478_v3  ;;  %vm1525_vm3 = vcmp.eq.f32.partialorder %v1524_v57, 8.507059e+37 }
 0x516   :  { %v1498_v55 = vmul.f32 %v2165_v51, %v1497_v4 }
 0x517   :  { %v2167_v24 = vpop.eup %2166  ;;  %v1480_v63 = vadd.f32 %v2163_v35, %v1479_v15 }
 0x518   :  { %v1499_v30 = vadd.f32 %v2165_v51, %v1498_v55  ;;  %v1516_v29 = vmul.f32 %v2167_v24, %v1514_v34  ;;  %v2169_v11 = vpop.eup %2168  ;;  %vm1521_vm0 = vweird.f32 %v2167_v24  ;;  %v2870_v34 = vld [vmem:[#allocation37_spill] sm:$0xff] }
 0x519   :  { %v1484_v12 = vsel %vm1483_vm12, %v2163_v35, %v1480_v63  ;;  %vm1522_vm2 = vmor %vm1520_vm1, %vm1521_vm0 }
 0x51a   :  { %v1489_v50 = vsel %vm1486_vm14, %v1488_v39, %v1484_v12  ;;  %v1503_v45 = vsel %vm1502_vm13, %v2165_v51, %v1499_v30  ;;  %v1517_v36 = vsub.f32 1.0, %v1516_v29 }
 0x51b   :  { %v1508_v40 = vsel %vm1505_vm15, %v1507_v25, %v1503_v45  ;;  %v1531_v16 = vmul.f32 %v2169_v11, %v1489_v50 }
 0x51c   :  { %v1530_v17 = vmul.f32 %v1508_v40, %v2805_v54  ;;  %v1518_v19 = vmul.f32 %v2167_v24, %v1517_v36 }
 0x51e   :  { %v2813_v28 = vadd.f32 %v1531_v16, %v1530_v17  ;;  %v1519_v58 = vadd.f32 %v2167_v24, %v1518_v19 }
 0x520   :  { %2170 = vtanh.f32 %v2813_v28  ;;  %v1523_v0 = vsel %vm1522_vm2, %v2167_v24, %v1519_v58 }
 0x521   :  { %v1528_v42 = vsel %vm1525_vm3, %v1527_v27, %v1523_v0 }
 0x526   :  { %v2171_v5 = vpop.eup %2170 }
 0x527   :  { %v1534_v62 = vmul.f32 %v2171_v5, %v1528_v42 }
 0x529   :  { %v1540_v6 = vpack.c.bf16 %v1534_v62, %v1534_v62 }
 0x52b   :  { %1549 = vmatmul.bf16.vlgmr.msra.gmra.mxu0 %v1540_v6  ;;  %1562 = vmatmul.bf16.vlgmr.msra.gmra.mxu1 %v1540_v6 }
 0x52c   :  { %1575 = vmatmul.bf16.vlgmr.msra.gmra.mxu2 %v1540_v6  ;;  %1588 = vmatmul.bf16.vlgmr.msra.gmra.mxu3 %v1540_v6 }
 0x5a8   :  { %v1550_v54 = vpop.f32.mrf.mxu0  ;;  %v1563_v18 = vpop.f32.mrf.mxu1 }
 0x5a9   :  { %v1593_v38 = vadd.f32 %v1550_v54, %v2867_v23  ;;  %v1594_v41 = vadd.f32 %v1563_v18, %v2868_v37 }
 0x5ab   :  { %v1979_v47 = vmul.f32 -1.442695, %v1593_v38  ;;  %v1980_v48 = vmul.f32 -1.442695, %v1594_v41 }
 0x5ad   :  { %2172 = vpow2.f32 %v1979_v47 }
 0x5ae   :  { %2174 = vpow2.f32 %v1980_v48 }
 0x5af   :  { %v1576_v49 = vpop.f32.mrf.mxu2  ;;  %v1589_v53 = vpop.f32.mrf.mxu3 }
 0x5b0   :  { %v1596_v60 = vadd.f32 %v1589_v53, %v2869_v59  ;;  %v1552_v61 = vpop.f32.mrf.mxu0  ;;  %v1565_v1 = vpop.f32.mrf.mxu1  ;;  %v1595_v35 = vadd.f32 %v1576_v49, %v2870_v34 }
 0x5b2   :  { %v1981_v7 = vmul.f32 -1.442695, %v1596_v60 }
 0x5b3   :  { %v2173_v8 = vpop.eup %2172 }
 0x5b4   :  { %v2175_v9 = vpop.eup %2174  ;;  %v1600_v13 = vadd.f32 1.0, %v2173_v8  ;;  %2176 = vpow2.f32 %v1981_v7 }
 0x5b5   :  { %v1619_v20 = vadd.f32 1.0, %v2175_v9 }
 0x5b6   :  { %2178 = vrcp.f32 %v1600_v13  ;;  %v1612_v3 = vand.u32 2147483648, %v1600_v13  ;;  %v1610_v14 = vand.u32 2147483647, %v1600_v13  ;;  %vm1606_vm6 = vweird.f32 %v1600_v13 }
 0x5b7   :  { %2180 = vrcp.f32 %v1619_v20  ;;  %v1578_v21 = vpop.f32.mrf.mxu2  ;;  %v1591_v22 = vpop.f32.mrf.mxu3  ;;  %v1631_v4 = vand.u32 2147483648, %v1619_v20  ;;  %v1629_v31 = vand.u32 2147483647, %v1619_v20  ;;  %vm1625_vm7 = vweird.f32 %v1619_v20 }
 0x5b8   :  { %v1613_v24 = vor.u32 1.1754944e-38, %v1612_v3  ;;  %vm1611_vm10 = vcmp.eq.f32.partialorder %v1610_v14, 8.507059e+37 }
 0x5b9   :  { %v1632_v30 = vor.u32 1.1754944e-38, %v1631_v4  ;;  %vm1630_vm11 = vcmp.eq.f32.partialorder %v1629_v31, 8.507059e+37 }
 0x5ba   :  { %v2177_v26 = vpop.eup %2176 }
 0x5bb   :  { %v1639_v32 = vadd.f32 1.0, %v2177_v26 }
 0x5bc   :  { %v2179_v33 = vpop.eup %2178 }
 0x5bd   :  { %v2181_v43 = vpop.eup %2180  ;;  %v1602_v44 = vmul.f32 %v2179_v33, %v1600_v13  ;;  %2182 = vrcp.f32 %v1639_v32  ;;  %vm1607_vm4 = vweird.f32 %v2179_v33  ;;  %v1651_v58 = vand.u32 2147483648, %v1639_v32 }
 0x5be   :  { %v1621_v51 = vmul.f32 %v2181_v43, %v1619_v20  ;;  %2184 = vtanh.f32 %v1595_v35  ;;  %vm1626_vm5 = vweird.f32 %v2181_v43  ;;  %vm1608_vm8 = vmor %vm1606_vm6, %vm1607_vm4  ;;  %vm1645_vm13 = vweird.f32 %v1639_v32 }
 0x5bf   :  { %v1603_v52 = vsub.f32 1.0, %v1602_v44  ;;  %vm1627_vm9 = vmor %vm1625_vm7, %vm1626_vm5  ;;  %v1649_v46 = vand.u32 2147483647, %v1639_v32  ;;  %v1652_v0 = vor.u32 1.1754944e-38, %v1651_v58 }
 0x5c0   :  { %v1622_v2 = vsub.f32 1.0, %v1621_v51 }
 0x5c1   :  { %v1604_v10 = vmul.f32 %v2179_v33, %v1603_v52  ;;  %vm1650_vm15 = vcmp.eq.f32.partialorder %v1649_v46, 8.507059e+37 }
 0x5c2   :  { %v1623_v15 = vmul.f32 %v2181_v43, %v1622_v2 }
 0x5c3   :  { %v2183_v55 = vpop.eup %2182  ;;  %v1605_v56 = vadd.f32 %v2179_v33, %v1604_v10 }
 0x5c4   :  { %v1624_v63 = vadd.f32 %v2181_v43, %v1623_v15  ;;  %v1641_v39 = vmul.f32 %v2183_v55, %v1639_v32  ;;  %v2185_v25 = vpop.eup %2184  ;;  %vm1646_vm12 = vweird.f32 %v2183_v55 }
 0x5c5   :  { %v1609_v29 = vsel %vm1608_vm8, %v2179_v33, %v1605_v56  ;;  %vm1647_vm14 = vmor %vm1645_vm13, %vm1646_vm12 }
 0x5c6   :  { %v1614_v12 = vsel %vm1611_vm10, %v1613_v24, %v1609_v29  ;;  %v1628_v11 = vsel %vm1627_vm9, %v2181_v43, %v1624_v63  ;;  %v1642_v50 = vsub.f32 1.0, %v1641_v39 }
 0x5c7   :  { %v1633_v45 = vsel %vm1630_vm11, %v1632_v30, %v1628_v11  ;;  %v1656_v36 = vmul.f32 %v2185_v25, %v1614_v12 }
 0x5c8   :  { %v1655_v40 = vmul.f32 %v1633_v45, %v2813_v28  ;;  %v1643_v16 = vmul.f32 %v2183_v55, %v1642_v50 }
 0x5ca   :  { %v1657_v17 = vadd.f32 %v1656_v36, %v1655_v40  ;;  %v1644_v19 = vadd.f32 %v2183_v55, %v1643_v16 }
 0x5cc   :  { %2186 = vtanh.f32 %v1657_v17  ;;  %v1648_v57 = vsel %vm1647_vm14, %v2183_v55, %v1644_v19 }
 0x5cd   :  { %v1653_v28 = vsel %vm1650_vm15, %v1652_v0, %v1648_v57 }
 0x5d2   :  { %v2187_v27 = vpop.eup %2186 }
 0x5d3   :  { %v1659_v5 = vmul.f32 %v2187_v27, %v1653_v28 }
 0x5d5   :  { %1666 = vst [vmem:[#allocation13] sm:$0xff] %v1659_v5 }
 0x5d6   :  { %1677 = dma.vmem_to_hbm [thread:$0]  %s1673_s3, 128, %s1675_s13, [#allocation7]  }
 0x5d7   :  { %2314 = dma.done.wait [#allocation7], 128  }
 0x5d8   :  { %2315 = vsyncadd [#allocation7], 4294967168 }
 0x5d9   :  { %1682 = vsyncpa [#allocation6], 1 }
 0x5da   :  { %1683 = vsyncpa [#allocation9], 1 }
 0x5db   :  { %1684 = vsyncpa [#allocation12], 1 }
 0x5dc   :  { %1685 = vsyncpa [#allocation7], 1 }

</bundles_post_ra>
